<compile_context>
chip_gen: v6e
topology: v6e:2x2x1
jax: 0.10.0
libtpu: 0.0.40
codegen_flags: <defaults>
</compile_context>

<pallas_src>
import functools
import math

import jax
import jax.numpy as jnp
from jax.experimental import pallas as pl
from jax.experimental.pallas import tpu as pltpu

EPS = 1e-8  # matches nn.GroupNorm(..., eps=1e-08) in the reference module


# ----------------------------------------------------------------------------
# In-kernel helpers
# ----------------------------------------------------------------------------
def _gln(x, g, b):
    """GroupNorm(1, C) over the full (C, T) tile, one-pass variance, f32 stats."""
    m = jnp.mean(x)
    var = jnp.maximum(jnp.mean(x * x) - m * m, 0.0)
    return (x - m) * jax.lax.rsqrt(var + EPS) * g + b


def _layer_chain(x, skip, w1_ref, wrs_ref, brs_ref, dw_ref, hvec_ref, dilations):
    """Run a stack of DepthConv1d layers fully in VMEM.

    x, skip: (C, T) f32 carried values.
    w1_ref  : (L, H, C)   bf16   pointwise in
    wrs_ref : (L, 2C, H)  bf16   [res_out; skip_out] fused weights
    brs_ref : (L, 2C, 1)  f32    fused biases
    dw_ref  : (L, H, 3)   f32    depthwise kernel
    hvec_ref: (L, H, 8)   f32    [b1, g1, be1, db, g2, be2, a1, a2]
    """
    C, T = x.shape
    if not dilations:
        return x, skip
    H = w1_ref.shape[1]
    col = jax.lax.broadcasted_iota(jnp.int32, (H, T), 1)

    for l, d in enumerate(dilations):
        hv = hvec_ref[l]                                   # (H, 8) f32
        b1, g1, be1 = hv[:, 0:1], hv[:, 1:2], hv[:, 2:3]
        db, g2, be2 = hv[:, 3:4], hv[:, 4:5], hv[:, 5:6]
        a1, a2 = hv[:, 6:7], hv[:, 7:8]

        # 1x1 conv C -> H (bf16 MXU, f32 accumulate) + PReLU + GroupNorm
        h = jnp.dot(w1_ref[l], x.astype(jnp.bfloat16),
                    preferred_element_type=jnp.float32) + b1
        h = jnp.where(h >= 0.0, h, a1 * h)
        h = _gln(h, g1, be1)

        # depthwise dilated conv, kernel=3, padding=d -> same-length output
        dw = dw_ref[l]                                     # (H, 3)
        h_left = jnp.where(col >= d, pltpu.roll(h, shift=d % T, axis=1), 0.0)
        h_right = jnp.where(col < T - d, pltpu.roll(h, shift=(T - d) % T, axis=1), 0.0)
        y = dw[:, 0:1] * h_left + dw[:, 1:2] * h + dw[:, 2:3] * h_right + db

        # PReLU + GroupNorm
        y = jnp.where(y >= 0.0, y, a2 * y)
        y = _gln(y, g2, be2)

        # fused residual + skip 1x1 convs (one (2C, H) matmul), in-register accumulation
        rs = jnp.dot(wrs_ref[l], y.astype(jnp.bfloat16),
                     preferred_element_type=jnp.float32) + brs_ref[l]   # (2C, T)
        x = x + rs[:C]
        skip = skip + rs[C:]
    return x, skip


# ----------------------------------------------------------------------------
# Pallas kernels (one grid step == one (stream/param-set, batch) element)
# ----------------------------------------------------------------------------
def _input_phase_kernel(x_ref, lng_ref, lnb_ref, bnw_ref, bnb_ref,
                        w1_ref, wrs_ref, brs_ref, dw_ref, hvec_ref,
                        feat_ref, skip_ref, *, dilations):
    """GroupNorm(1, Cin) -> 1x1 conv Cin->BN -> unshared input stack."""
    x = x_ref[...].astype(jnp.float32)                     # (Cin, T)
    x = _gln(x, lng_ref[...], lnb_ref[...])
    x = jnp.dot(bnw_ref[...], x.astype(jnp.bfloat16),
                preferred_element_type=jnp.float32) + bnb_ref[...]   # (BN, T)
    skip = jnp.zeros_like(x)
    x, skip = _layer_chain(x, skip, w1_ref, wrs_ref, brs_ref, dw_ref, hvec_ref,
                           dilations)
    feat_ref[...] = x
    skip_ref[...] = skip


def _mid_phase_kernel(x_ref, skin_ref,
                      w1_ref, wrs_ref, brs_ref, dw_ref, hvec_ref,
                      out_ref, skout_ref, *, dilations):
    """Shared middle stacks, carrying both activation and skip accumulator."""
    x, skip = _layer_chain(x_ref[...], skin_ref[...],
                           w1_ref, wrs_ref, brs_ref, dw_ref, hvec_ref, dilations)
    out_ref[...] = x
    skout_ref[...] = skip


def _out_phase_kernel(x_ref, skin_ref,
                      w1_ref, wrs_ref, brs_ref, dw_ref, hvec_ref,
                      ha_ref, hw_ref, hb_ref,
                      o_ref, *, dilations):
    """Unshared output stacks followed by the PReLU + 1x1 output head."""
    _, skip = _layer_chain(x_ref[...], skin_ref[...],
                           w1_ref, wrs_ref, brs_ref, dw_ref, hvec_ref, dilations)
    skip = jnp.where(skip >= 0.0, skip, ha_ref[...] * skip)
    o_ref[...] = jnp.dot(hw_ref[...], skip.astype(jnp.bfloat16),
                         preferred_element_type=jnp.float32) + hb_ref[...]


# ----------------------------------------------------------------------------
# pallas_call wrappers
# ----------------------------------------------------------------------------
def _nbytes(a):
    return math.prod(a.shape) * a.dtype.itemsize


def _sum_bytes(arrs):
    return sum(_nbytes(a) for a in arrs)


def _layer_flops(L, C, H, T):
    # pointwise-in + fused res/skip matmuls + depthwise & elementwise work
    return L * (2 * H * C * T + 4 * C * H * T + 16 * H * T)


def _cost(flops, operands, out_shapes):
    return pl.CostEstimate(flops=int(flops), transcendentals=0,
                           bytes_accessed=int(_sum_bytes(operands) + _sum_bytes(out_shapes)))


def _cparams(n_parallel_axes, hint_bytes):
    # raise v5e's 16 MiB scoped default; stay under v7x's 64 MiB physical VMEM
    vmem = int(min(max(2 * hint_bytes + (8 << 20), 32 << 20), 48 << 20))
    return pltpu.CompilerParams(
        dimension_semantics=("parallel",) * n_parallel_axes,
        vmem_limit_bytes=vmem)


def input_phase(x2, params):
    S, B, Cin, T = x2.shape                    # S == 2 streams (r, a)
    g = params["grp_in"]
    dil = params["dil_in"]
    L = len(dil)
    BN = params["bn_w"].shape[1]
    H = g["w1"].shape[2]
    kern = functools.partial(_input_phase_kernel, dilations=dil)
    operands = (x2, params["ln_g"], params["ln_b"], params["bn_w"], params["bn_b"],
                g["w1"], g["wrs"], g["brs"], g["dw"], g["hvec"])
    out_shape = (jax.ShapeDtypeStruct((S, B, BN, T), jnp.float32),
                 jax.ShapeDtypeStruct((S, B, BN, T), jnp.float32))
    in_specs = [
        pl.BlockSpec((None, None, Cin, T), lambda s, b: (s, b, 0, 0)),
        pl.BlockSpec((None, Cin, 1), lambda s, b: (s, 0, 0)),
        pl.BlockSpec((None, Cin, 1), lambda s, b: (s, 0, 0)),
        pl.BlockSpec((None, BN, Cin), lambda s, b: (s, 0, 0)),
        pl.BlockSpec((None, BN, 1), lambda s, b: (s, 0, 0)),
        pl.BlockSpec((None, L, H, BN), lambda s, b: (s, 0, 0, 0)),
        pl.BlockSpec((None, L, 2 * BN, H), lambda s, b: (s, 0, 0, 0)),
        pl.BlockSpec((None, L, 2 * BN, 1), lambda s, b: (s, 0, 0, 0)),
        pl.BlockSpec((None, L, H, 3), lambda s, b: (s, 0, 0, 0)),
        pl.BlockSpec((None, L, H, 8), lambda s, b: (s, 0, 0, 0)),
    ]
    out_specs = (pl.BlockSpec((None, None, BN, T), lambda s, b: (s, b, 0, 0)),
                 pl.BlockSpec((None, None, BN, T), lambda s, b: (s, b, 0, 0)))
    flops = S * B * (2 * BN * Cin * T + _layer_flops(L, BN, H, T))
    return pl.pallas_call(
        kern, out_shape=out_shape, grid=(S, B),
        in_specs=in_specs, out_specs=out_specs,
        compiler_params=_cparams(2, _sum_bytes(operands)),
        cost_estimate=_cost(flops, operands, out_shape),
    )(*operands)


def mid_phase(x, skip, params):
    G, C, T = x.shape                          # G == 2B (both streams batched)
    g = params["grp_mid"]
    dil = params["dil_mid"]
    L = len(dil)
    H = g["w1"].shape[1]
    kern = functools.partial(_mid_phase_kernel, dilations=dil)
    operands = (x, skip, g["w1"], g["wrs"], g["brs"], g["dw"], g["hvec"])
    out_shape = (jax.ShapeDtypeStruct((G, C, T), jnp.float32),
                 jax.ShapeDtypeStruct((G, C, T), jnp.float32))

    def w_spec(shape):
        return pl.BlockSpec(shape, lambda i: (0, 0, 0))

    in_specs = [
        pl.BlockSpec((None, C, T), lambda i: (i, 0, 0)),
        pl.BlockSpec((None, C, T), lambda i: (i, 0, 0)),
        w_spec((L, H, C)),
        w_spec((L, 2 * C, H)),
        w_spec((L, 2 * C, 1)),
        w_spec((L, H, 3)),
        w_spec((L, H, 8)),
    ]
    out_specs = (pl.BlockSpec((None, C, T), lambda i: (i, 0, 0)),
                 pl.BlockSpec((None, C, T), lambda i: (i, 0, 0)))
    flops = G * _layer_flops(L, C, H, T)
    return pl.pallas_call(
        kern, out_shape=out_shape, grid=(G,),
        in_specs=in_specs, out_specs=out_specs,
        compiler_params=_cparams(1, _sum_bytes(operands)),
        cost_estimate=_cost(flops, operands, out_shape),
    )(*operands)


def out_phase(x, skip, params):
    G, C, T = x.shape                          # G == 2B
    g = params["grp_out"]
    dil = params["dil_out"]
    L = len(dil)
    H = g["w1"].shape[2]
    O = params["head_w"].shape[1]
    kern = functools.partial(_out_phase_kernel, dilations=dil)
    operands = (x, skip, g["w1"], g["wrs"], g["brs"], g["dw"], g["hvec"],
                params["head_a"], params["head_w"], params["head_b"])
    out_shape = jax.ShapeDtypeStruct((2, G, O, T), jnp.float32)
    in_specs = [
        pl.BlockSpec((None, C, T), lambda p, e: (e, 0, 0)),
        pl.BlockSpec((None, C, T), lambda p, e: (e, 0, 0)),
        pl.BlockSpec((None, L, H, C), lambda p, e: (p, 0, 0, 0)),
        pl.BlockSpec((None, L, 2 * C, H), lambda p, e: (p, 0, 0, 0)),
        pl.BlockSpec((None, L, 2 * C, 1), lambda p, e: (p, 0, 0, 0)),
        pl.BlockSpec((None, L, H, 3), lambda p, e: (p, 0, 0, 0)),
        pl.BlockSpec((None, L, H, 8), lambda p, e: (p, 0, 0, 0)),
        pl.BlockSpec((None, 1, 1), lambda p, e: (p, 0, 0)),
        pl.BlockSpec((None, O, C), lambda p, e: (p, 0, 0)),
        pl.BlockSpec((None, O, 1), lambda p, e: (p, 0, 0)),
    ]
    out_specs = pl.BlockSpec((None, None, O, T), lambda p, e: (p, e, 0, 0))
    flops = 2 * G * (_layer_flops(L, C, H, T) + 2 * O * C * T)
    return pl.pallas_call(
        kern, out_shape=out_shape, grid=(2, G),
        in_specs=in_specs, out_specs=out_specs,
        compiler_params=_cparams(2, _sum_bytes(operands)),
        cost_estimate=_cost(flops, operands, (out_shape,)),
    )(*operands)


# ----------------------------------------------------------------------------
# Deterministic parameter initialization (mimics PyTorch defaults, synthetic)
# ----------------------------------------------------------------------------
def _make_group(key, n_layers, C, H, kernel=3):
    """Stacked DepthConv1d parameters for n_layers layers of one stack group."""
    L = n_layers
    k = jax.random.split(key, 6)
    bw = 1.0 / math.sqrt(C)
    w1 = jax.random.uniform(k[0], (L, H, C), jnp.float32, -bw, bw)
    b1 = jax.random.uniform(k[1], (L, H, 1), jnp.float32, -bw, bw)
    bd = 1.0 / math.sqrt(kernel)                    # depthwise: fan_in = 1 * kernel
    dw = jax.random.uniform(k[2], (L, H, kernel), jnp.float32, -bd, bd)
    db = jax.random.uniform(k[3], (L, H, 1), jnp.float32, -bd, bd)
    br = 1.0 / math.sqrt(H)
    wrs = jax.random.uniform(k[4], (L, 2 * C, H), jnp.float32, -br, br)   # [res; skip]
    brs = jax.random.uniform(k[5], (L, 2 * C, 1), jnp.float32, -br, br)
    ones = jnp.ones((L, H, 1), jnp.float32)
    zeros = jnp.zeros((L, H, 1), jnp.float32)
    alpha = jnp.full((L, H, 1), 0.25, jnp.float32)  # PReLU slope broadcast over H
    hvec = jnp.concatenate([b1, ones, zeros, db, ones, zeros, alpha, alpha], axis=-1)
    return dict(w1=w1.astype(jnp.bfloat16), wrs=wrs.astype(jnp.bfloat16),
                brs=brs, dw=dw, hvec=hvec)


def _stack_sets(g0, g1):
    return {k: jnp.stack([g0[k], g1[k]], axis=0) for k in g0}


def make_tcn_params(key, input_dim, output_dim, BN_dim, hidden_dim,
                    layer, stack, unshared_in, unshared_out, kernel=3):
    assert unshared_in >= 1 and unshared_out >= 1, "fused kernels expect >=1 layer per unshared group"
    n_in = unshared_in * layer
    n_mid = (stack - unshared_in - unshared_out) * layer
    n_out = unshared_out * layer

    def dils(n_stacks):
        return tuple(2 ** i for _ in range(n_stacks) for i in range(layer))

    keys = jax.random.split(key, 10)
    bb = 1.0 / math.sqrt(input_dim)
    bn_w = jax.random.uniform(keys[0], (2, BN_dim, input_dim), jnp.float32, -bb, bb)
    bn_b = jax.random.uniform(keys[1], (2, BN_dim, 1), jnp.float32, -bb, bb)
    bh = 1.0 / math.sqrt(BN_dim)
    head_w = jax.random.uniform(keys[2], (2, output_dim, BN_dim), jnp.float32, -bh, bh)
    head_b = jax.random.uniform(keys[3], (2, output_dim, 1), jnp.float32, -bh, bh)

    params = dict(
        ln_g=jnp.ones((2, input_dim, 1), jnp.float32),
        ln_b=jnp.zeros((2, input_dim, 1), jnp.float32),
        bn_w=bn_w.astype(jnp.bfloat16), bn_b=bn_b,
        head_w=head_w.astype(jnp.bfloat16), head_b=head_b,
        head_a=jnp.full((2, 1, 1), 0.25, jnp.float32),
        grp_in=_stack_sets(_make_group(keys[4], n_in, BN_dim, hidden_dim, kernel),
                           _make_group(keys[5], n_in, BN_dim, hidden_dim, kernel)),
        grp_mid=(_make_group(keys[6], n_mid, BN_dim, hidden_dim, kernel)
                 if n_mid > 0 else None),
        grp_out=_stack_sets(_make_group(keys[7], n_out, BN_dim, hidden_dim, kernel),
                            _make_group(keys[8], n_out, BN_dim, hidden_dim, kernel)),
        dil_in=dils(unshared_in),
        dil_mid=dils(stack - unshared_in - unshared_out),
        dil_out=dils(unshared_out),
    )
    return params


# ----------------------------------------------------------------------------
# TCN forward (skip=True path) — 3 pallas_calls total
# ----------------------------------------------------------------------------
def tcn_forward(params, input_r, input_a):
    B, Cin, T = input_r.shape
    x2 = jnp.stack([input_r, input_a], axis=0)                 # (2, B, Cin, T)

    feat, skip = input_phase(x2, params)                       # (2, B, BN, T) each
    BN = feat.shape[2]
    feat_flat = feat.reshape(2 * B, BN, T)                     # [r batches ; a batches]
    skip_flat = skip.reshape(2 * B, BN, T)

    if params["grp_mid"] is not None and len(params["dil_mid"]) > 0:
        out_mid, skip_mid = mid_phase(feat_flat, skip_flat, params)
    else:
        out_mid, skip_mid = feat_flat, skip_flat

    head_out = out_phase(out_mid, skip_mid, params)            # (2, 2B, O, T)

    outputr1 = head_out[0, :B]     # TCN_out1 / output1 on stream r
    outputr2 = head_out[1, :B]     # TCN_out2 / output2 on stream r
    outputa1 = head_out[0, B:]     # TCN_out1 / output1 on stream a
    outputa2 = head_out[1, B:]     # TCN_out2 / output2 on stream a
    feature_r = feat[0]
    feature_a = feat[1]
    return outputr1, outputr2, outputa1, outputa2, feature_r, feature_a


# ----------------------------------------------------------------------------
if __name__ == "__main__":
    # small, lane-dense demo config consistent with the module (T multiple of 128,
    # channel counts multiples of 8)
    B = 2
    input_dim = 16
    output_dim = 32
    BN_dim = 16
    hidden_dim = 32
    layer = 2
    stack = 4
    unshared_in = 1
    unshared_out = 1
    T = 128

    key = jax.random.PRNGKey(0)
    k_params, k_r, k_a = jax.random.split(key, 3)
    params = make_tcn_params(k_params, input_dim, output_dim, BN_dim, hidden_dim,
                             layer, stack, unshared_in, unshared_out, kernel=3)

    input_r = jax.random.normal(k_r, (B, input_dim, T), jnp.float32)
    input_a = jax.random.normal(k_a, (B, input_dim, T), jnp.float32)

    outs = tcn_forward(params, input_r, input_a)
    outs = jax.block_until_ready(outs)

    # light sanity check on shapes / finiteness
    assert outs[0].shape == (B, output_dim, T)
    assert outs[1].shape == (B, output_dim, T)
    assert outs[4].shape == (B, BN_dim, T)
    assert all(bool(jnp.isfinite(o).all()) for o in outs)

    print("KERNEL_OK")
</pallas_src>

<mosaic_0001>
module attributes {stable_mosaic.version = 11 : i64} {
  func.func @_input_phase_kernel(%arg0: i32, %arg1: i32, %arg2: memref<1x1x16x128xf32, #tpu.memory_space<vmem>>, %arg3: memref<1x16x1xf32, #tpu.memory_space<vmem>>, %arg4: memref<1x16x1xf32, #tpu.memory_space<vmem>>, %arg5: memref<1x16x16xbf16, #tpu.memory_space<vmem>>, %arg6: memref<1x16x1xf32, #tpu.memory_space<vmem>>, %arg7: memref<1x2x32x16xbf16, #tpu.memory_space<vmem>>, %arg8: memref<1x2x32x32xbf16, #tpu.memory_space<vmem>>, %arg9: memref<1x2x32x1xf32, #tpu.memory_space<vmem>>, %arg10: memref<1x2x32x3xf32, #tpu.memory_space<vmem>>, %arg11: memref<1x2x32x8xf32, #tpu.memory_space<vmem>>, %arg12: memref<1x1x16x128xf32, #tpu.memory_space<vmem>>, %arg13: memref<1x1x16x128xf32, #tpu.memory_space<vmem>>) attributes {dimension_semantics = [#tpu.dimension_semantics<parallel>, #tpu.dimension_semantics<parallel>], iteration_bounds = array<i64: 2, 2>, scalar_prefetch = 0 : i64, scratch_operands = 0 : i64, tpu.core_type = #tpu.core_type<tc>, window_params = [{transform_indices = @transform_0, window_bounds = array<i64: 1, 1, 16, 128>}, {transform_indices = @transform_1, window_bounds = array<i64: 1, 16, 1>}, {transform_indices = @transform_2, window_bounds = array<i64: 1, 16, 1>}, {transform_indices = @transform_3, window_bounds = array<i64: 1, 16, 16>}, {transform_indices = @transform_4, window_bounds = array<i64: 1, 16, 1>}, {transform_indices = @transform_5, window_bounds = array<i64: 1, 2, 32, 16>}, {transform_indices = @transform_6, window_bounds = array<i64: 1, 2, 32, 32>}, {transform_indices = @transform_7, window_bounds = array<i64: 1, 2, 32, 1>}, {transform_indices = @transform_8, window_bounds = array<i64: 1, 2, 32, 3>}, {transform_indices = @transform_9, window_bounds = array<i64: 1, 2, 32, 8>}, {transform_indices = @transform_10, window_bounds = array<i64: 1, 1, 16, 128>}, {transform_indices = @transform_11, window_bounds = array<i64: 1, 1, 16, 128>}]} {
    %c0 = arith.constant 0 : index
    %c0_0 = arith.constant 0 : index
    %c0_1 = arith.constant 0 : index
    %c0_2 = arith.constant 0 : index
    %0 = vector.load %arg2[%c0, %c0_0, %c0_1, %c0_2] : memref<1x1x16x128xf32, #tpu.memory_space<vmem>>, vector<1x1x16x128xf32>
    %1 = vector.shape_cast %0 : vector<1x1x16x128xf32> to vector<16x128xf32>
    %c0_3 = arith.constant 0 : index
    %c0_4 = arith.constant 0 : index
    %c0_5 = arith.constant 0 : index
    %2 = vector.load %arg3[%c0_3, %c0_4, %c0_5] : memref<1x16x1xf32, #tpu.memory_space<vmem>>, vector<1x16x1xf32>
    %3 = vector.shape_cast %2 : vector<1x16x1xf32> to vector<16x1xf32>
    %c0_6 = arith.constant 0 : index
    %c0_7 = arith.constant 0 : index
    %c0_8 = arith.constant 0 : index
    %4 = vector.load %arg4[%c0_6, %c0_7, %c0_8] : memref<1x16x1xf32, #tpu.memory_space<vmem>>, vector<1x16x1xf32>
    %5 = vector.shape_cast %4 : vector<1x16x1xf32> to vector<16x1xf32>
    %6 = vector.shape_cast %1 : vector<16x128xf32> to vector<1x16x128xf32>
    %cst = arith.constant dense<0.000000e+00> : vector<1xf32>
    %7 = vector.multi_reduction <add>, %6, %cst [1, 2] : vector<1x16x128xf32> to vector<1xf32>
    %8 = vector.shape_cast %7 : vector<1xf32> to vector<1x1x1xf32>
    %9 = vector.extract %8[0, 0, 0] : f32 from vector<1x1x1xf32>
    %cst_9 = arith.constant 2.048000e+03 : f32
    %10 = arith.divf %9, %cst_9 : f32
    %11 = arith.mulf %1, %1 : vector<16x128xf32>
    %12 = vector.shape_cast %11 : vector<16x128xf32> to vector<1x16x128xf32>
    %cst_10 = arith.constant dense<0.000000e+00> : vector<1xf32>
    %13 = vector.multi_reduction <add>, %12, %cst_10 [1, 2] : vector<1x16x128xf32> to vector<1xf32>
    %14 = vector.shape_cast %13 : vector<1xf32> to vector<1x1x1xf32>
    %15 = vector.extract %14[0, 0, 0] : f32 from vector<1x1x1xf32>
    %cst_11 = arith.constant 2.048000e+03 : f32
    %16 = arith.divf %15, %cst_11 : f32
    %17 = arith.mulf %10, %10 : f32
    %18 = arith.subf %16, %17 : f32
    %cst_12 = arith.constant 0.000000e+00 : f32
    %19 = arith.maximumf %18, %cst_12 : f32
    %20 = vector.broadcast %10 : f32 to vector<16x128xf32>
    %21 = arith.subf %1, %20 : vector<16x128xf32>
    %cst_13 = arith.constant 9.99999993E-9 : f32
    %22 = arith.addf %19, %cst_13 : f32
    %23 = math.rsqrt %22 : f32
    %24 = vector.broadcast %23 : f32 to vector<16x128xf32>
    %25 = arith.mulf %21, %24 : vector<16x128xf32>
    %26 = vector.broadcast %3 : vector<16x1xf32> to vector<16x128xf32>
    %27 = arith.mulf %25, %26 : vector<16x128xf32>
    %28 = vector.broadcast %5 : vector<16x1xf32> to vector<16x128xf32>
    %29 = arith.addf %27, %28 : vector<16x128xf32>
    %c0_14 = arith.constant 0 : index
    %c0_15 = arith.constant 0 : index
    %c0_16 = arith.constant 0 : index
    %30 = vector.load %arg5[%c0_14, %c0_15, %c0_16] : memref<1x16x16xbf16, #tpu.memory_space<vmem>>, vector<1x16x16xbf16>
    %31 = vector.shape_cast %30 : vector<1x16x16xbf16> to vector<16x16xbf16>
    %32 = arith.truncf %29 : vector<16x128xf32> to vector<16x128xbf16>
    %cst_17 = arith.constant dense<0.000000e+00> : vector<16x128xf32>
    %33 = tpu.matmul %31, %32, %cst_17 {dimension_numbers = #tpu.dot_dimension_numbers<[1], [0], [0], [1], [0, 0, 1, 1], [], []>} : vector<16x16xbf16>, vector<16x128xbf16>, vector<16x128xf32> -> vector<16x128xf32>
    %c0_18 = arith.constant 0 : index
    %c0_19 = arith.constant 0 : index
    %c0_20 = arith.constant 0 : index
    %34 = vector.load %arg6[%c0_18, %c0_19, %c0_20] : memref<1x16x1xf32, #tpu.memory_space<vmem>>, vector<1x16x1xf32>
    %35 = vector.shape_cast %34 : vector<1x16x1xf32> to vector<16x1xf32>
    %36 = vector.broadcast %35 : vector<16x1xf32> to vector<16x128xf32>
    %37 = arith.addf %33, %36 : vector<16x128xf32>
    %cst_21 = arith.constant 0.000000e+00 : f32
    %38 = vector.broadcast %cst_21 : f32 to vector<16x128xf32>
    %39 = tpu.iota {dimensions = array<i32: 1>} : vector<32x128xi32>
    %c0_22 = arith.constant 0 : index
    %c0_23 = arith.constant 0 : index
    %c0_24 = arith.constant 0 : index
    %c0_25 = arith.constant 0 : index
    %40 = vector.load %arg11[%c0_22, %c0_23, %c0_24, %c0_25] : memref<1x2x32x8xf32, #tpu.memory_space<vmem>>, vector<1x1x32x8xf32>
    %41 = vector.shape_cast %40 : vector<1x1x32x8xf32> to vector<32x8xf32>
    %42 = vector.extract_strided_slice %41 {offsets = [0, 0], sizes = [32, 1], strides = [1, 1]} : vector<32x8xf32> to vector<32x1xf32>
    %43 = vector.extract_strided_slice %41 {offsets = [0, 1], sizes = [32, 1], strides = [1, 1]} : vector<32x8xf32> to vector<32x1xf32>
    %44 = vector.extract_strided_slice %41 {offsets = [0, 2], sizes = [32, 1], strides = [1, 1]} : vector<32x8xf32> to vector<32x1xf32>
    %45 = vector.extract_strided_slice %41 {offsets = [0, 3], sizes = [32, 1], strides = [1, 1]} : vector<32x8xf32> to vector<32x1xf32>
    %46 = vector.extract_strided_slice %41 {offsets = [0, 4], sizes = [32, 1], strides = [1, 1]} : vector<32x8xf32> to vector<32x1xf32>
    %47 = vector.extract_strided_slice %41 {offsets = [0, 5], sizes = [32, 1], strides = [1, 1]} : vector<32x8xf32> to vector<32x1xf32>
    %48 = vector.extract_strided_slice %41 {offsets = [0, 6], sizes = [32, 1], strides = [1, 1]} : vector<32x8xf32> to vector<32x1xf32>
    %49 = vector.extract_strided_slice %41 {offsets = [0, 7], sizes = [32, 1], strides = [1, 1]} : vector<32x8xf32> to vector<32x1xf32>
    %c0_26 = arith.constant 0 : index
    %c0_27 = arith.constant 0 : index
    %c0_28 = arith.constant 0 : index
    %c0_29 = arith.constant 0 : index
    %50 = vector.load %arg7[%c0_26, %c0_27, %c0_28, %c0_29] : memref<1x2x32x16xbf16, #tpu.memory_space<vmem>>, vector<1x1x32x16xbf16>
    %51 = vector.shape_cast %50 : vector<1x1x32x16xbf16> to vector<32x16xbf16>
    %52 = arith.truncf %37 : vector<16x128xf32> to vector<16x128xbf16>
    %cst_30 = arith.constant dense<0.000000e+00> : vector<32x128xf32>
    %53 = tpu.matmul %51, %52, %cst_30 {dimension_numbers = #tpu.dot_dimension_numbers<[1], [0], [0], [1], [0, 0, 1, 1], [], []>} : vector<32x16xbf16>, vector<16x128xbf16>, vector<32x128xf32> -> vector<32x128xf32>
    %54 = vector.broadcast %42 : vector<32x1xf32> to vector<32x128xf32>
    %55 = arith.addf %53, %54 : vector<32x128xf32>
    %cst_31 = arith.constant 0.000000e+00 : f32
    %56 = vector.broadcast %cst_31 : f32 to vector<32x128xf32>
    %57 = arith.cmpf oge, %55, %56 : vector<32x128xf32>
    %58 = vector.broadcast %48 : vector<32x1xf32> to vector<32x128xf32>
    %59 = arith.mulf %58, %55 : vector<32x128xf32>
    %60 = arith.select %57, %55, %59 : vector<32x128xi1>, vector<32x128xf32>
    %61 = vector.shape_cast %60 : vector<32x128xf32> to vector<1x32x128xf32>
    %cst_32 = arith.constant dense<0.000000e+00> : vector<1xf32>
    %62 = vector.multi_reduction <add>, %61, %cst_32 [1, 2] : vector<1x32x128xf32> to vector<1xf32>
    %63 = vector.shape_cast %62 : vector<1xf32> to vector<1x1x1xf32>
    %64 = vector.extract %63[0, 0, 0] : f32 from vector<1x1x1xf32>
    %cst_33 = arith.constant 4.096000e+03 : f32
    %65 = arith.divf %64, %cst_33 : f32
    %66 = arith.mulf %60, %60 : vector<32x128xf32>
    %67 = vector.shape_cast %66 : vector<32x128xf32> to vector<1x32x128xf32>
    %cst_34 = arith.constant dense<0.000000e+00> : vector<1xf32>
    %68 = vector.multi_reduction <add>, %67, %cst_34 [1, 2] : vector<1x32x128xf32> to vector<1xf32>
    %69 = vector.shape_cast %68 : vector<1xf32> to vector<1x1x1xf32>
    %70 = vector.extract %69[0, 0, 0] : f32 from vector<1x1x1xf32>
    %cst_35 = arith.constant 4.096000e+03 : f32
    %71 = arith.divf %70, %cst_35 : f32
    %72 = arith.mulf %65, %65 : f32
    %73 = arith.subf %71, %72 : f32
    %cst_36 = arith.constant 0.000000e+00 : f32
    %74 = arith.maximumf %73, %cst_36 : f32
    %75 = vector.broadcast %65 : f32 to vector<32x128xf32>
    %76 = arith.subf %60, %75 : vector<32x128xf32>
    %cst_37 = arith.constant 9.99999993E-9 : f32
    %77 = arith.addf %74, %cst_37 : f32
    %78 = math.rsqrt %77 : f32
    %79 = vector.broadcast %78 : f32 to vector<32x128xf32>
    %80 = arith.mulf %76, %79 : vector<32x128xf32>
    %81 = vector.broadcast %43 : vector<32x1xf32> to vector<32x128xf32>
    %82 = arith.mulf %80, %81 : vector<32x128xf32>
    %83 = vector.broadcast %44 : vector<32x1xf32> to vector<32x128xf32>
    %84 = arith.addf %82, %83 : vector<32x128xf32>
    %c0_38 = arith.constant 0 : index
    %c0_39 = arith.constant 0 : index
    %c0_40 = arith.constant 0 : index
    %c0_41 = arith.constant 0 : index
    %85 = vector.load %arg10[%c0_38, %c0_39, %c0_40, %c0_41] : memref<1x2x32x3xf32, #tpu.memory_space<vmem>>, vector<1x1x32x3xf32>
    %86 = vector.shape_cast %85 : vector<1x1x32x3xf32> to vector<32x3xf32>
    %c1_i32 = arith.constant 1 : i32
    %87 = vector.broadcast %c1_i32 : i32 to vector<32x128xi32>
    %88 = arith.cmpi sge, %39, %87 : vector<32x128xi32>
    %c1_i32_42 = arith.constant 1 : i32
    %89 = tpu.dynamic_rotate %84 by %c1_i32_42 dim 1 : vector<32x128xf32>, i32 -> vector<32x128xf32>
    %cst_43 = arith.constant 0.000000e+00 : f32
    %90 = vector.broadcast %cst_43 : f32 to vector<32x128xf32>
    %91 = arith.select %88, %89, %90 : vector<32x128xi1>, vector<32x128xf32>
    %c127_i32 = arith.constant 127 : i32
    %92 = vector.broadcast %c127_i32 : i32 to vector<32x128xi32>
    %93 = arith.cmpi slt, %39, %92 : vector<32x128xi32>
    %c127_i32_44 = arith.constant 127 : i32
    %94 = tpu.dynamic_rotate %84 by %c127_i32_44 dim 1 : vector<32x128xf32>, i32 -> vector<32x128xf32>
    %cst_45 = arith.constant 0.000000e+00 : f32
    %95 = vector.broadcast %cst_45 : f32 to vector<32x128xf32>
    %96 = arith.select %93, %94, %95 : vector<32x128xi1>, vector<32x128xf32>
    %97 = vector.extract_strided_slice %86 {offsets = [0, 0], sizes = [32, 1], strides = [1, 1]} : vector<32x3xf32> to vector<32x1xf32>
    %98 = vector.broadcast %97 : vector<32x1xf32> to vector<32x128xf32>
    %99 = arith.mulf %98, %91 : vector<32x128xf32>
    %100 = vector.extract_strided_slice %86 {offsets = [0, 1], sizes = [32, 1], strides = [1, 1]} : vector<32x3xf32> to vector<32x1xf32>
    %101 = vector.broadcast %100 : vector<32x1xf32> to vector<32x128xf32>
    %102 = arith.mulf %101, %84 : vector<32x128xf32>
    %103 = arith.addf %99, %102 : vector<32x128xf32>
    %104 = vector.extract_strided_slice %86 {offsets = [0, 2], sizes = [32, 1], strides = [1, 1]} : vector<32x3xf32> to vector<32x1xf32>
    %105 = vector.broadcast %104 : vector<32x1xf32> to vector<32x128xf32>
    %106 = arith.mulf %105, %96 : vector<32x128xf32>
    %107 = arith.addf %103, %106 : vector<32x128xf32>
    %108 = vector.broadcast %45 : vector<32x1xf32> to vector<32x128xf32>
    %109 = arith.addf %107, %108 : vector<32x128xf32>
    %cst_46 = arith.constant 0.000000e+00 : f32
    %110 = vector.broadcast %cst_46 : f32 to vector<32x128xf32>
    %111 = arith.cmpf oge, %109, %110 : vector<32x128xf32>
    %112 = vector.broadcast %49 : vector<32x1xf32> to vector<32x128xf32>
    %113 = arith.mulf %112, %109 : vector<32x128xf32>
    %114 = arith.select %111, %109, %113 : vector<32x128xi1>, vector<32x128xf32>
    %115 = vector.shape_cast %114 : vector<32x128xf32> to vector<1x32x128xf32>
    %cst_47 = arith.constant dense<0.000000e+00> : vector<1xf32>
    %116 = vector.multi_reduction <add>, %115, %cst_47 [1, 2] : vector<1x32x128xf32> to vector<1xf32>
    %117 = vector.shape_cast %116 : vector<1xf32> to vector<1x1x1xf32>
    %118 = vector.extract %117[0, 0, 0] : f32 from vector<1x1x1xf32>
    %cst_48 = arith.constant 4.096000e+03 : f32
    %119 = arith.divf %118, %cst_48 : f32
    %120 = arith.mulf %114, %114 : vector<32x128xf32>
    %121 = vector.shape_cast %120 : vector<32x128xf32> to vector<1x32x128xf32>
    %cst_49 = arith.constant dense<0.000000e+00> : vector<1xf32>
    %122 = vector.multi_reduction <add>, %121, %cst_49 [1, 2] : vector<1x32x128xf32> to vector<1xf32>
    %123 = vector.shape_cast %122 : vector<1xf32> to vector<1x1x1xf32>
    %124 = vector.extract %123[0, 0, 0] : f32 from vector<1x1x1xf32>
    %cst_50 = arith.constant 4.096000e+03 : f32
    %125 = arith.divf %124, %cst_50 : f32
    %126 = arith.mulf %119, %119 : f32
    %127 = arith.subf %125, %126 : f32
    %cst_51 = arith.constant 0.000000e+00 : f32
    %128 = arith.maximumf %127, %cst_51 : f32
    %129 = vector.broadcast %119 : f32 to vector<32x128xf32>
    %130 = arith.subf %114, %129 : vector<32x128xf32>
    %cst_52 = arith.constant 9.99999993E-9 : f32
    %131 = arith.addf %128, %cst_52 : f32
    %132 = math.rsqrt %131 : f32
    %133 = vector.broadcast %132 : f32 to vector<32x128xf32>
    %134 = arith.mulf %130, %133 : vector<32x128xf32>
    %135 = vector.broadcast %46 : vector<32x1xf32> to vector<32x128xf32>
    %136 = arith.mulf %134, %135 : vector<32x128xf32>
    %137 = vector.broadcast %47 : vector<32x1xf32> to vector<32x128xf32>
    %138 = arith.addf %136, %137 : vector<32x128xf32>
    %c0_53 = arith.constant 0 : index
    %c0_54 = arith.constant 0 : index
    %c0_55 = arith.constant 0 : index
    %c0_56 = arith.constant 0 : index
    %139 = vector.load %arg8[%c0_53, %c0_54, %c0_55, %c0_56] : memref<1x2x32x32xbf16, #tpu.memory_space<vmem>>, vector<1x1x32x32xbf16>
    %140 = vector.shape_cast %139 : vector<1x1x32x32xbf16> to vector<32x32xbf16>
    %141 = arith.truncf %138 : vector<32x128xf32> to vector<32x128xbf16>
    %cst_57 = arith.constant dense<0.000000e+00> : vector<32x128xf32>
    %142 = tpu.matmul %140, %141, %cst_57 {dimension_numbers = #tpu.dot_dimension_numbers<[1], [0], [0], [1], [0, 0, 1, 1], [], []>} : vector<32x32xbf16>, vector<32x128xbf16>, vector<32x128xf32> -> vector<32x128xf32>
    %c0_58 = arith.constant 0 : index
    %c0_59 = arith.constant 0 : index
    %c0_60 = arith.constant 0 : index
    %c0_61 = arith.constant 0 : index
    %143 = vector.load %arg9[%c0_58, %c0_59, %c0_60, %c0_61] : memref<1x2x32x1xf32, #tpu.memory_space<vmem>>, vector<1x1x32x1xf32>
    %144 = vector.shape_cast %143 : vector<1x1x32x1xf32> to vector<32x1xf32>
    %145 = vector.broadcast %144 : vector<32x1xf32> to vector<32x128xf32>
    %146 = arith.addf %142, %145 : vector<32x128xf32>
    %147 = vector.extract_strided_slice %146 {offsets = [0, 0], sizes = [16, 128], strides = [1, 1]} : vector<32x128xf32> to vector<16x128xf32>
    %148 = arith.addf %37, %147 : vector<16x128xf32>
    %149 = vector.extract_strided_slice %146 {offsets = [16, 0], sizes = [16, 128], strides = [1, 1]} : vector<32x128xf32> to vector<16x128xf32>
    %150 = arith.addf %38, %149 : vector<16x128xf32>
    %c0_62 = arith.constant 0 : index
    %c1 = arith.constant 1 : index
    %c0_63 = arith.constant 0 : index
    %c0_64 = arith.constant 0 : index
    %151 = vector.load %arg11[%c0_62, %c1, %c0_63, %c0_64] : memref<1x2x32x8xf32, #tpu.memory_space<vmem>>, vector<1x1x32x8xf32>
    %152 = vector.shape_cast %151 : vector<1x1x32x8xf32> to vector<32x8xf32>
    %153 = vector.extract_strided_slice %152 {offsets = [0, 0], sizes = [32, 1], strides = [1, 1]} : vector<32x8xf32> to vector<32x1xf32>
    %154 = vector.extract_strided_slice %152 {offsets = [0, 1], sizes = [32, 1], strides = [1, 1]} : vector<32x8xf32> to vector<32x1xf32>
    %155 = vector.extract_strided_slice %152 {offsets = [0, 2], sizes = [32, 1], strides = [1, 1]} : vector<32x8xf32> to vector<32x1xf32>
    %156 = vector.extract_strided_slice %152 {offsets = [0, 3], sizes = [32, 1], strides = [1, 1]} : vector<32x8xf32> to vector<32x1xf32>
    %157 = vector.extract_strided_slice %152 {offsets = [0, 4], sizes = [32, 1], strides = [1, 1]} : vector<32x8xf32> to vector<32x1xf32>
    %158 = vector.extract_strided_slice %152 {offsets = [0, 5], sizes = [32, 1], strides = [1, 1]} : vector<32x8xf32> to vector<32x1xf32>
    %159 = vector.extract_strided_slice %152 {offsets = [0, 6], sizes = [32, 1], strides = [1, 1]} : vector<32x8xf32> to vector<32x1xf32>
    %160 = vector.extract_strided_slice %152 {offsets = [0, 7], sizes = [32, 1], strides = [1, 1]} : vector<32x8xf32> to vector<32x1xf32>
    %c0_65 = arith.constant 0 : index
    %c1_66 = arith.constant 1 : index
    %c0_67 = arith.constant 0 : index
    %c0_68 = arith.constant 0 : index
    %161 = vector.load %arg7[%c0_65, %c1_66, %c0_67, %c0_68] : memref<1x2x32x16xbf16, #tpu.memory_space<vmem>>, vector<1x1x32x16xbf16>
    %162 = vector.shape_cast %161 : vector<1x1x32x16xbf16> to vector<32x16xbf16>
    %163 = arith.truncf %148 : vector<16x128xf32> to vector<16x128xbf16>
    %cst_69 = arith.constant dense<0.000000e+00> : vector<32x128xf32>
    %164 = tpu.matmul %162, %163, %cst_69 {dimension_numbers = #tpu.dot_dimension_numbers<[1], [0], [0], [1], [0, 0, 1, 1], [], []>} : vector<32x16xbf16>, vector<16x128xbf16>, vector<32x128xf32> -> vector<32x128xf32>
    %165 = vector.broadcast %153 : vector<32x1xf32> to vector<32x128xf32>
    %166 = arith.addf %164, %165 : vector<32x128xf32>
    %cst_70 = arith.constant 0.000000e+00 : f32
    %167 = vector.broadcast %cst_70 : f32 to vector<32x128xf32>
    %168 = arith.cmpf oge, %166, %167 : vector<32x128xf32>
    %169 = vector.broadcast %159 : vector<32x1xf32> to vector<32x128xf32>
    %170 = arith.mulf %169, %166 : vector<32x128xf32>
    %171 = arith.select %168, %166, %170 : vector<32x128xi1>, vector<32x128xf32>
    %172 = vector.shape_cast %171 : vector<32x128xf32> to vector<1x32x128xf32>
    %cst_71 = arith.constant dense<0.000000e+00> : vector<1xf32>
    %173 = vector.multi_reduction <add>, %172, %cst_71 [1, 2] : vector<1x32x128xf32> to vector<1xf32>
    %174 = vector.shape_cast %173 : vector<1xf32> to vector<1x1x1xf32>
    %175 = vector.extract %174[0, 0, 0] : f32 from vector<1x1x1xf32>
    %cst_72 = arith.constant 4.096000e+03 : f32
    %176 = arith.divf %175, %cst_72 : f32
    %177 = arith.mulf %171, %171 : vector<32x128xf32>
    %178 = vector.shape_cast %177 : vector<32x128xf32> to vector<1x32x128xf32>
    %cst_73 = arith.constant dense<0.000000e+00> : vector<1xf32>
    %179 = vector.multi_reduction <add>, %178, %cst_73 [1, 2] : vector<1x32x128xf32> to vector<1xf32>
    %180 = vector.shape_cast %179 : vector<1xf32> to vector<1x1x1xf32>
    %181 = vector.extract %180[0, 0, 0] : f32 from vector<1x1x1xf32>
    %cst_74 = arith.constant 4.096000e+03 : f32
    %182 = arith.divf %181, %cst_74 : f32
    %183 = arith.mulf %176, %176 : f32
    %184 = arith.subf %182, %183 : f32
    %cst_75 = arith.constant 0.000000e+00 : f32
    %185 = arith.maximumf %184, %cst_75 : f32
    %186 = vector.broadcast %176 : f32 to vector<32x128xf32>
    %187 = arith.subf %171, %186 : vector<32x128xf32>
    %cst_76 = arith.constant 9.99999993E-9 : f32
    %188 = arith.addf %185, %cst_76 : f32
    %189 = math.rsqrt %188 : f32
    %190 = vector.broadcast %189 : f32 to vector<32x128xf32>
    %191 = arith.mulf %187, %190 : vector<32x128xf32>
    %192 = vector.broadcast %154 : vector<32x1xf32> to vector<32x128xf32>
    %193 = arith.mulf %191, %192 : vector<32x128xf32>
    %194 = vector.broadcast %155 : vector<32x1xf32> to vector<32x128xf32>
    %195 = arith.addf %193, %194 : vector<32x128xf32>
    %c0_77 = arith.constant 0 : index
    %c1_78 = arith.constant 1 : index
    %c0_79 = arith.constant 0 : index
    %c0_80 = arith.constant 0 : index
    %196 = vector.load %arg10[%c0_77, %c1_78, %c0_79, %c0_80] : memref<1x2x32x3xf32, #tpu.memory_space<vmem>>, vector<1x1x32x3xf32>
    %197 = vector.shape_cast %196 : vector<1x1x32x3xf32> to vector<32x3xf32>
    %c2_i32 = arith.constant 2 : i32
    %198 = vector.broadcast %c2_i32 : i32 to vector<32x128xi32>
    %199 = arith.cmpi sge, %39, %198 : vector<32x128xi32>
    %c2_i32_81 = arith.constant 2 : i32
    %200 = tpu.dynamic_rotate %195 by %c2_i32_81 dim 1 : vector<32x128xf32>, i32 -> vector<32x128xf32>
    %cst_82 = arith.constant 0.000000e+00 : f32
    %201 = vector.broadcast %cst_82 : f32 to vector<32x128xf32>
    %202 = arith.select %199, %200, %201 : vector<32x128xi1>, vector<32x128xf32>
    %c126_i32 = arith.constant 126 : i32
    %203 = vector.broadcast %c126_i32 : i32 to vector<32x128xi32>
    %204 = arith.cmpi slt, %39, %203 : vector<32x128xi32>
    %c126_i32_83 = arith.constant 126 : i32
    %205 = tpu.dynamic_rotate %195 by %c126_i32_83 dim 1 : vector<32x128xf32>, i32 -> vector<32x128xf32>
    %cst_84 = arith.constant 0.000000e+00 : f32
    %206 = vector.broadcast %cst_84 : f32 to vector<32x128xf32>
    %207 = arith.select %204, %205, %206 : vector<32x128xi1>, vector<32x128xf32>
    %208 = vector.extract_strided_slice %197 {offsets = [0, 0], sizes = [32, 1], strides = [1, 1]} : vector<32x3xf32> to vector<32x1xf32>
    %209 = vector.broadcast %208 : vector<32x1xf32> to vector<32x128xf32>
    %210 = arith.mulf %209, %202 : vector<32x128xf32>
    %211 = vector.extract_strided_slice %197 {offsets = [0, 1], sizes = [32, 1], strides = [1, 1]} : vector<32x3xf32> to vector<32x1xf32>
    %212 = vector.broadcast %211 : vector<32x1xf32> to vector<32x128xf32>
    %213 = arith.mulf %212, %195 : vector<32x128xf32>
    %214 = arith.addf %210, %213 : vector<32x128xf32>
    %215 = vector.extract_strided_slice %197 {offsets = [0, 2], sizes = [32, 1], strides = [1, 1]} : vector<32x3xf32> to vector<32x1xf32>
    %216 = vector.broadcast %215 : vector<32x1xf32> to vector<32x128xf32>
    %217 = arith.mulf %216, %207 : vector<32x128xf32>
    %218 = arith.addf %214, %217 : vector<32x128xf32>
    %219 = vector.broadcast %156 : vector<32x1xf32> to vector<32x128xf32>
    %220 = arith.addf %218, %219 : vector<32x128xf32>
    %cst_85 = arith.constant 0.000000e+00 : f32
    %221 = vector.broadcast %cst_85 : f32 to vector<32x128xf32>
    %222 = arith.cmpf oge, %220, %221 : vector<32x128xf32>
    %223 = vector.broadcast %160 : vector<32x1xf32> to vector<32x128xf32>
    %224 = arith.mulf %223, %220 : vector<32x128xf32>
    %225 = arith.select %222, %220, %224 : vector<32x128xi1>, vector<32x128xf32>
    %226 = vector.shape_cast %225 : vector<32x128xf32> to vector<1x32x128xf32>
    %cst_86 = arith.constant dense<0.000000e+00> : vector<1xf32>
    %227 = vector.multi_reduction <add>, %226, %cst_86 [1, 2] : vector<1x32x128xf32> to vector<1xf32>
    %228 = vector.shape_cast %227 : vector<1xf32> to vector<1x1x1xf32>
    %229 = vector.extract %228[0, 0, 0] : f32 from vector<1x1x1xf32>
    %cst_87 = arith.constant 4.096000e+03 : f32
    %230 = arith.divf %229, %cst_87 : f32
    %231 = arith.mulf %225, %225 : vector<32x128xf32>
    %232 = vector.shape_cast %231 : vector<32x128xf32> to vector<1x32x128xf32>
    %cst_88 = arith.constant dense<0.000000e+00> : vector<1xf32>
    %233 = vector.multi_reduction <add>, %232, %cst_88 [1, 2] : vector<1x32x128xf32> to vector<1xf32>
    %234 = vector.shape_cast %233 : vector<1xf32> to vector<1x1x1xf32>
    %235 = vector.extract %234[0, 0, 0] : f32 from vector<1x1x1xf32>
    %cst_89 = arith.constant 4.096000e+03 : f32
    %236 = arith.divf %235, %cst_89 : f32
    %237 = arith.mulf %230, %230 : f32
    %238 = arith.subf %236, %237 : f32
    %cst_90 = arith.constant 0.000000e+00 : f32
    %239 = arith.maximumf %238, %cst_90 : f32
    %240 = vector.broadcast %230 : f32 to vector<32x128xf32>
    %241 = arith.subf %225, %240 : vector<32x128xf32>
    %cst_91 = arith.constant 9.99999993E-9 : f32
    %242 = arith.addf %239, %cst_91 : f32
    %243 = math.rsqrt %242 : f32
    %244 = vector.broadcast %243 : f32 to vector<32x128xf32>
    %245 = arith.mulf %241, %244 : vector<32x128xf32>
    %246 = vector.broadcast %157 : vector<32x1xf32> to vector<32x128xf32>
    %247 = arith.mulf %245, %246 : vector<32x128xf32>
    %248 = vector.broadcast %158 : vector<32x1xf32> to vector<32x128xf32>
    %249 = arith.addf %247, %248 : vector<32x128xf32>
    %c0_92 = arith.constant 0 : index
    %c1_93 = arith.constant 1 : index
    %c0_94 = arith.constant 0 : index
    %c0_95 = arith.constant 0 : index
    %250 = vector.load %arg8[%c0_92, %c1_93, %c0_94, %c0_95] : memref<1x2x32x32xbf16, #tpu.memory_space<vmem>>, vector<1x1x32x32xbf16>
    %251 = vector.shape_cast %250 : vector<1x1x32x32xbf16> to vector<32x32xbf16>
    %252 = arith.truncf %249 : vector<32x128xf32> to vector<32x128xbf16>
    %cst_96 = arith.constant dense<0.000000e+00> : vector<32x128xf32>
    %253 = tpu.matmul %251, %252, %cst_96 {dimension_numbers = #tpu.dot_dimension_numbers<[1], [0], [0], [1], [0, 0, 1, 1], [], []>} : vector<32x32xbf16>, vector<32x128xbf16>, vector<32x128xf32> -> vector<32x128xf32>
    %c0_97 = arith.constant 0 : index
    %c1_98 = arith.constant 1 : index
    %c0_99 = arith.constant 0 : index
    %c0_100 = arith.constant 0 : index
    %254 = vector.load %arg9[%c0_97, %c1_98, %c0_99, %c0_100] : memref<1x2x32x1xf32, #tpu.memory_space<vmem>>, vector<1x1x32x1xf32>
    %255 = vector.shape_cast %254 : vector<1x1x32x1xf32> to vector<32x1xf32>
    %256 = vector.broadcast %255 : vector<32x1xf32> to vector<32x128xf32>
    %257 = arith.addf %253, %256 : vector<32x128xf32>
    %258 = vector.extract_strided_slice %257 {offsets = [0, 0], sizes = [16, 128], strides = [1, 1]} : vector<32x128xf32> to vector<16x128xf32>
    %259 = arith.addf %148, %258 : vector<16x128xf32>
    %260 = vector.extract_strided_slice %257 {offsets = [16, 0], sizes = [16, 128], strides = [1, 1]} : vector<32x128xf32> to vector<16x128xf32>
    %261 = arith.addf %150, %260 : vector<16x128xf32>
    %c0_101 = arith.constant 0 : index
    %c0_102 = arith.constant 0 : index
    %c0_103 = arith.constant 0 : index
    %c0_104 = arith.constant 0 : index
    %262 = vector.load %arg12[%c0_101, %c0_102, %c0_103, %c0_104] : memref<1x1x16x128xf32, #tpu.memory_space<vmem>>, vector<1x1x16x128xf32>
    %263 = vector.shape_cast %262 : vector<1x1x16x128xf32> to vector<16x128xf32>
    %264 = vector.shape_cast %259 : vector<16x128xf32> to vector<1x1x16x128xf32>
    tpu.vector_store %arg12[%c0_101, %c0_102, %c0_103, %c0_104], %264 {strides = array<i32>} : memref<1x1x16x128xf32, #tpu.memory_space<vmem>>, vector<1x1x16x128xf32>,
    %c0_105 = arith.constant 0 : index
    %c0_106 = arith.constant 0 : index
    %c0_107 = arith.constant 0 : index
    %c0_108 = arith.constant 0 : index
    %265 = vector.load %arg13[%c0_105, %c0_106, %c0_107, %c0_108] : memref<1x1x16x128xf32, #tpu.memory_space<vmem>>, vector<1x1x16x128xf32>
    %266 = vector.shape_cast %265 : vector<1x1x16x128xf32> to vector<16x128xf32>
    %267 = vector.shape_cast %261 : vector<16x128xf32> to vector<1x1x16x128xf32>
    tpu.vector_store %arg13[%c0_105, %c0_106, %c0_107, %c0_108], %267 {strides = array<i32>} : memref<1x1x16x128xf32, #tpu.memory_space<vmem>>, vector<1x1x16x128xf32>,
    return
  }
  func.func @transform_0(%arg0: i32, %arg1: i32) -> (i32, i32, i32, i32) {
    %c0_i32 = arith.constant 0 : i32
    %c0_i32_0 = arith.constant 0 : i32
    %c0_i32_1 = arith.constant 0 : i32
    return %arg0, %arg1, %c0_i32, %c0_i32_0 : i32, i32, i32, i32
  }
  func.func @transform_1(%arg0: i32, %arg1: i32) -> (i32, i32, i32) {
    %c0_i32 = arith.constant 0 : i32
    %c0_i32_0 = arith.constant 0 : i32
    %c0_i32_1 = arith.constant 0 : i32
    return %arg0, %c0_i32, %c0_i32_0 : i32, i32, i32
  }
  func.func @transform_2(%arg0: i32, %arg1: i32) -> (i32, i32, i32) {
    %c0_i32 = arith.constant 0 : i32
    %c0_i32_0 = arith.constant 0 : i32
    %c0_i32_1 = arith.constant 0 : i32
    return %arg0, %c0_i32, %c0_i32_0 : i32, i32, i32
  }
  func.func @transform_3(%arg0: i32, %arg1: i32) -> (i32, i32, i32) {
    %c0_i32 = arith.constant 0 : i32
    %c0_i32_0 = arith.constant 0 : i32
    %c0_i32_1 = arith.constant 0 : i32
    return %arg0, %c0_i32, %c0_i32_0 : i32, i32, i32
  }
  func.func @transform_4(%arg0: i32, %arg1: i32) -> (i32, i32, i32) {
    %c0_i32 = arith.constant 0 : i32
    %c0_i32_0 = arith.constant 0 : i32
    %c0_i32_1 = arith.constant 0 : i32
    return %arg0, %c0_i32, %c0_i32_0 : i32, i32, i32
  }
  func.func @transform_5(%arg0: i32, %arg1: i32) -> (i32, i32, i32, i32) {
    %c0_i32 = arith.constant 0 : i32
    %c0_i32_0 = arith.constant 0 : i32
    %c0_i32_1 = arith.constant 0 : i32
    %c0_i32_2 = arith.constant 0 : i32
    return %arg0, %c0_i32, %c0_i32_0, %c0_i32_1 : i32, i32, i32, i32
  }
  func.func @transform_6(%arg0: i32, %arg1: i32) -> (i32, i32, i32, i32) {
    %c0_i32 = arith.constant 0 : i32
    %c0_i32_0 = arith.constant 0 : i32
    %c0_i32_1 = arith.constant 0 : i32
    %c0_i32_2 = arith.constant 0 : i32
    return %arg0, %c0_i32, %c0_i32_0, %c0_i32_1 : i32, i32, i32, i32
  }
  func.func @transform_7(%arg0: i32, %arg1: i32) -> (i32, i32, i32, i32) {
    %c0_i32 = arith.constant 0 : i32
    %c0_i32_0 = arith.constant 0 : i32
    %c0_i32_1 = arith.constant 0 : i32
    %c0_i32_2 = arith.constant 0 : i32
    return %arg0, %c0_i32, %c0_i32_0, %c0_i32_1 : i32, i32, i32, i32
  }
  func.func @transform_8(%arg0: i32, %arg1: i32) -> (i32, i32, i32, i32) {
    %c0_i32 = arith.constant 0 : i32
    %c0_i32_0 = arith.constant 0 : i32
    %c0_i32_1 = arith.constant 0 : i32
    %c0_i32_2 = arith.constant 0 : i32
    return %arg0, %c0_i32, %c0_i32_0, %c0_i32_1 : i32, i32, i32, i32
  }
  func.func @transform_9(%arg0: i32, %arg1: i32) -> (i32, i32, i32, i32) {
    %c0_i32 = arith.constant 0 : i32
    %c0_i32_0 = arith.constant 0 : i32
    %c0_i32_1 = arith.constant 0 : i32
    %c0_i32_2 = arith.constant 0 : i32
    return %arg0, %c0_i32, %c0_i32_0, %c0_i32_1 : i32, i32, i32, i32
  }
  func.func @transform_10(%arg0: i32, %arg1: i32) -> (i32, i32, i32, i32) {
    %c0_i32 = arith.constant 0 : i32
    %c0_i32_0 = arith.constant 0 : i32
    %c0_i32_1 = arith.constant 0 : i32
    return %arg0, %arg1, %c0_i32, %c0_i32_0 : i32, i32, i32, i32
  }
  func.func @transform_11(%arg0: i32, %arg1: i32) -> (i32, i32, i32, i32) {
    %c0_i32 = arith.constant 0 : i32
    %c0_i32_0 = arith.constant 0 : i32
    %c0_i32_1 = arith.constant 0 : i32
    return %arg0, %arg1, %c0_i32, %c0_i32_0 : i32, i32, i32, i32
  }
}

</mosaic_0001>

<bundles_post_ra>
// kernel: tpu_custom_call.1
= control target key start
LH: loop header
LB: loop body
LE: loop exit
PB: predicated region body
PF: predicated region fallthrough
CT: control target
= control target key end

     0   :  { %s3275_s0 = inlined_call_operand.vmem [shape: f32[2,2,16,128], index: 0, kind: input, shape index: {}]   ;;  %s3276_s1 = inlined_call_operand.vmem [shape: f32[2,16,1], index: 1, kind: input, shape index: {}]   ;;  %s3277_s2 = inlined_call_operand.vmem [shape: f32[2,16,1], index: 2, kind: input, shape index: {}]   ;;  %s3278_s3 = inlined_call_operand.vmem [shape: bf16[2,16,16], index: 3, kind: input, shape index: {}]   ;;  %s3279_s4 = inlined_call_operand.vmem [shape: f32[2,16,1], index: 4, kind: input, shape index: {}]   ;;  %s3280_s5 = inlined_call_operand.vmem [shape: bf16[2,2,32,16], index: 5, kind: input, shape index: {}]   ;;  %s3281_s6 = inlined_call_operand.vmem [shape: bf16[2,2,32,32], index: 6, kind: input, shape index: {}]   ;;  %s3282_s7 = inlined_call_operand.vmem [shape: f32[2,2,32,1], index: 7, kind: input, shape index: {}]   ;;  %s3283_s8 = inlined_call_operand.vmem [shape: f32[2,2,32,3], index: 8, kind: input, shape index: {}]   ;;  %s3284_s9 = inlined_call_operand.vmem [shape: f32[2,2,32,8], index: 9, kind: input, shape index: {}]   ;;  %s3285_s10 = inlined_call_operand.hbm [shape: f32[2,2,16,128], index: 10, kind: output, shape index: {0}]   ;;  %s3286_s11 = inlined_call_operand.hbm [shape: f32[2,2,16,128], index: 11, kind: output, shape index: {1}]  }
   0x1   :  { %3293 = sst [smem:[#allocation15_spill]] %s3275_s0 }
   0x2   :  { %3294 = sst [smem:[#allocation16_spill]] %s3276_s1 }
   0x3   :  { %3295 = sst [smem:[#allocation17_spill]] %s3277_s2 }
   0x4   :  { %17 = vsyncpa [#allocation3], 0 }
   0x5   :  { %19 = vsyncpa [#allocation3 + $0x1], 0 }
   0x6   :  { %20 = vsyncpa [#allocation5], 0 }
   0x7   :  { %22 = vsyncpa [#allocation5 + $0x1], 0  ;;  %s2673_s17 = smov 0   ;;  %s2675_s18 = smov 0  }
   0x8   :  { %s2677_s19 = smov 0   ;;  %s2679_s20 = smov 0  }
   0x9   :  { %s2681_s21 = smov 0   ;;  %s2683_s22 = smov 0  }
   0xa   :  { %s2685_s23 = smov 0   ;;  %s2687_s24 = smov 0  }
   0xb LB: > { %3296 = sst [smem:[#allocation8_spill]] %s2572_s19  ;;  %s2128_s25 = sadd.s32 4294967295, %s2592_s24   ;;  %s2592_s24 = sphi %s2687_s24, %s28_s24   ;;  %s2588_s23 = sphi %s2685_s23, %s3314_s23   ;;  %s2584_s22 = sphi %s2683_s22, %s3313_s22   ;;  %s2580_s21 = sphi %s2681_s21, %s3312_s21   ;;  %s2576_s20 = sphi %s2679_s20, %s3311_s20   ;;  %s2572_s19 = sphi %s2677_s19, %s3310_s19   ;;  %s2568_s18 = sphi %s2675_s18, %s3316_s18   ;;  %s2564_s17 = sphi %s2673_s17, %s3315_s17  }
   0xc   : > { %3297 = sst [smem:[#allocation9_spill]] %s2584_s22  ;;  %s2129_s26 = sadd.s32 4294967294, %s2592_s24  }
   0xd   : > { %3298 = sst [smem:[#allocation10_spill]] %s2588_s23  ;;  %s37_s27 = sadd.s32 1, %s2584_s22 }
   0xe   : > { %p38_p0 = scmp.ge.s32.totalorder %s37_s27, 2  ;;  %s40_s28 = sadd.s32 1, %s2588_s23 }
   0xf   : > { %p321_p1 = scmp.ne.s32.totalorder %s2572_s19, %s2568_s18  ;;  %p322_p2 = scmp.eq.s32.totalorder %s2128_s25, 3 }
  0x10   : > { %s3318_s27 = smov (%p38_p0, %s37_s27), 0  ;;  %s3320_s28 = smov (!%p38_p0, %s40_s28), %s2588_s23 }
  0x11   : > { %3299 = sst [smem:[#allocation11_spill]] %s3318_s27  ;;  %s307_s29 = ssub.s32 %s2584_s22, %s3318_s27 }
  0x12   : > { %p2724_p3 = por %p322_p2, %p321_p1  ;;  %p42_p4 = scmp.ge.s32.totalorder %s3320_s28, 2 }
  0x13   : > { %p327_p5 = scmp.ne.s32.totalorder %s2568_s18, %s2564_s17  ;;  %p328_p6 = scmp.eq.s32.totalorder %s2129_s26, 3 }
  0x14   : > { %p2132_p7 = scmp.ge.s32.totalorder %s2592_s24, 1  ;;  %s3322_s28 = smov (%p42_p4, %s3320_s28), 0 }
  0x15   : > { %3301 = sst [smem:[#allocation12_spill]] %s3322_s28  ;;  %p2733_p8 = por %p328_p6, %p327_p5 }
  0x16   : > { %p458_p9 = scmp.lt.s32.totalorder %s2592_s24, 5  ;;  %s306_s13 = ssub.s32 %s2588_s23, %s3322_s28 }
  0x17   : > { %s3302_s12 = scalar_select %p2733_p8, 1, 0 }
  0x18   : > { %s311_s14 = sadd.s32 1, %s2572_s19  ;;  %s308_s15 = sor.u32 %s307_s29, %s306_s13 }
  0x19   : > { %3303 = sst [smem:[#allocation13_spill]] %s3302_s12  ;;  %p459_p10 = pnand %p2132_p7, %p458_p9 }
  0x1a   : > { %p309_p11 = scmp.eq.s32.totalorder %s308_s15, 0  ;;  %p552_p12 = scmp.lt.s32.totalorder (!%p459_p10), %s2580_s21, 1 }
  0x1b   : > { %462 = sbr.rel (%p459_p10) target bundleno = 2843 (0xb1b), region = 60  ;;  %p554_p13 = scmp.lt.s32.totalorder (!%p459_p10), %s2576_s20, 1 }
  0x1c   : > { %s2742_s16 = scalar_select %p309_p11, %s2572_s19, %s311_s14  }
  0x1d   : > { %s3305_s1 = sld [smem:[#allocation16_spill]] (!%p459_p10) }
  0x1e   : > { %3304 = sst [smem:[#allocation14_spill]] %s2742_s16 }
  0x1f   : > { %s3306_s0 = sld [smem:[#allocation15_spill]] (!%p459_p10) }
  0x20   : > { %v2594_v0 = vmov 0   ;;  %s2749_s25 = scalar_select %p552_p12, %s2580_s21, 1  ;;  %v2595_v30 = vmov 0.0   ;;  %vm2596_vm0 = vmmov 0   ;;  %vm698_vm1 = vcmask 130048  }
  0x21   : > { %2386 = vset.pattern.permute.xlu1 %v2594_v0  ;;  %2387 = vset.pattern.permute.xlu0 %v2594_v0  ;;  %s555_s26 = scalar_select %p554_p13, %s2576_s20, 1  ;;  %v2598_v50 = vmov 6   ;;  %v2599_v62 = vmov 1   ;;  %vm1239_vm12 = vcmask 261120  }
  0x22   : > { %s2136_s29 = sshll.u32 %s2749_s25, 2  ;;  %s2204_s14 = sshll.u32 %s2749_s25, 4  ;;  %2229 = vmatprep.subr.bf16.mxu0 %v2595_v30  ;;  %2231 = vmatprep.mubr.msk.bf16.mxu0 %vm2596_vm0, %v2595_v30 }
  0x23   : > { %s2135_s13 = sshll.u32 %s555_s26, 1  ;;  %s565_s23 = scalar_lea.vmem %s3305_s1, %s2204_s14 }
  0x24   : > { %s558_s15 = sadd.s32 %s2136_s29, %s2135_s13  ;;  %v609_v1 = vld [vmem:[%s565_s23] sm:$0xff]  ;;  %v610_v4 = vld [vmem:[%s565_s23 + $0x8] sm:$0xff]  ;;  %s3307_s2 = sld [smem:[#allocation17_spill]] }
  0x25   : > { %s2137_s22 = sshll.u32 %s558_s15, 3  ;;  %656 = vperm.xlu1 %2386, %v609_v1   ;;  %s580_s23 = scalar_lea.vmem %s3279_s4, %s2204_s14 }
  0x26   : > { %s560_s12 = scalar_lea.vmem %s3306_s0, %s2137_s22  ;;  %v681_v10 = vld [vmem:[%s580_s23] sm:$0xff]  ;;  %s2777_s16 = sshll.u32 %s2749_s25, 6  ;;  %v682_v11 = vld [vmem:[%s580_s23 + $0x8] sm:$0xff] }
  0x27   : > { %v2760_v2 = vld [vmem:[%s560_s12] sm:$0xff]  ;;  %v2762_v3 = vld [vmem:[%s560_s12 + $0x8] sm:$0xff]  ;;  %s2783_s13 = scalar_lea.vmem %s3284_s9, %s2777_s16  ;;  %s2597_s0 = smov 0.0  }
  0x28   : > { %v613_v5 = vadd.f32 %v2762_v3, %v2760_v2  ;;  %v626_v6 = vmul.f32 %v2760_v2, %v2760_v2  ;;  %v627_v7 = vmul.f32 %v2762_v3, %v2762_v3  ;;  %v2786_v12 = vld [vmem:[%s2783_s13] sm:$0xff]  ;;  %v2790_v13 = vld [vmem:[%s2783_s13 + $0x8] sm:$0xff]  ;;  %v2794_v14 = vld [vmem:[%s2783_s13 + $0x10] sm:$0xff] }
  0x29   : > { %661 = vperm.xlu1 %2386, %v610_v4   ;;  %v2825_v51 = vld [vmem:[%s2783_s13 + $0x18] sm:$0xff] }
  0x2a   : > { %s570_s19 = scalar_lea.vmem %s3307_s2, %s2204_s14  ;;  %614 = vadd.xlane.f32.xlu0 %v613_v5  ;;  %v628_v8 = vadd.f32 %v627_v7, %v626_v6  ;;  %s2206_s14 = sshll.u32 %s2749_s25, 3 }
  0x2b   : > { %v612_v9 = vld [vmem:[%s570_s19 + $0x8] sm:$0xff]  ;;  %v611_v15 = vld [vmem:[%s570_s19] sm:$0xff]  ;;  %s2801_s28 = scalar_lea.vmem %s3278_s3, %s2206_s14 }
  0x2c   : > { %v2451_v48 = vld [vmem:[%s2801_s28] sm:$0xff]   ;;  %s2603_s28 = smov 1  }
  0x2d   : > { %673 = vperm.xlu1 %2386, %v612_v9  }
  0x2e   : > { %629 = vadd.xlane.f32.xlu0 %v628_v8 }
  0x31   : > { %685 = vperm.xlu1 %2386, %v681_v10  }
  0x35   : > { %690 = vperm.xlu1 %2386, %v682_v11  }
  0x39   : > { %756 = vperm.xlu1 %2386, %v2786_v12  }
  0x3d   : > { %761 = vperm.xlu1 %2386, %v2790_v13  }
  0x41   : > { %766 = vperm.xlu1 %2386, %v2794_v14  }
  0x44   : > { %668 = vperm.xlu0 %2387, %v611_v15  }
  0x45   : > { %2388 = vset.pattern.permute.xlu1 %v2598_v50 }
  0x46   : > { %844 = vperm.xlu1 %2388, %v2786_v12  }
  0x48   : > { %2391 = vset.pattern.permute.xlu0 %v2599_v62 }
  0x4a   : > { %848 = vperm.xlu1 %2388, %v2790_v13  }
  0x4e   : > { %2389 = vset.pattern.permute.xlu1 %v2594_v0 }
  0x4f   : > { %771 = vperm.xlu1 %2389, %v2825_v51  }
  0x53   : > { %2390 = vset.pattern.permute.xlu1 %v2598_v50 }
  0x54   : > { %852 = vperm.xlu1 %2390, %v2794_v14  }
  0x58   : > { %856 = vperm.xlu1 %2390, %v2825_v51  }
  0x5c   : > { %2392 = vset.pattern.permute.xlu1 %v2599_v62 }
  0xa0   : > { %v657_v33 = vpop.permute.xlu1 %656 }
  0xa4   : > { %v662_v35 = vpop.permute.xlu1 %661 }
  0xa8   : > { %v674_v44 = vpop.permute.xlu1 %673 }
  0xac   : > { %v686_v52 = vpop.permute.xlu1 %685 }
  0xb0   : > { %v691_v55 = vpop.permute.xlu1 %690 }
  0xb3   : > { %v615_v16 = vpop.xlane.xlu0 %614 }
  0xb4   : > { %v616_v17 = vrot.slane %v615_v16, 4  ;;  %v757_v63 = vpop.permute.xlu1 %756 }
  0xb6   : > { %v617_v18 = vadd.f32 %v616_v17, %v615_v16 }
  0xb7   : > { %v630_v19 = vpop.xlane.xlu0 %629 }
  0xb8   : > { %v618_v20 = vrot.slane %v617_v18, 2  ;;  %v631_v21 = vrot.slane %v630_v19, 4  ;;  %v762_v1 = vpop.permute.xlu1 %761 }
  0xba   : > { %v632_v22 = vadd.f32 %v631_v21, %v630_v19  ;;  %v619_v23 = vadd.f32 %v618_v20, %v617_v18 }
  0xbc   : > { %v633_v24 = vrot.slane %v632_v22, 2  ;;  %v620_v25 = vrot.slane %v619_v23, 1 }
  0xbe   : > { %v621_v26 = vadd.f32 %v620_v25, %v619_v23  ;;  %v634_v27 = vadd.f32 %v633_v24, %v632_v22 }
  0xbf   : > { %v669_v41 = vpop.permute.xlu0 %668 }
  0xc0   : > { %2263 = vpush %v621_v26  ;;  %v635_v28 = vrot.slane %v634_v27, 1 }
  0xc2   : > { %v636_v29 = vadd.f32 %v635_v28, %v634_v27 }
  0xc4   : > { %2265 = vpush %v636_v29 }
  0xf1   : > { %s2264_s19 = spop %2263 }
  0xf2   : > { %s625_s22 = smul.f32 0.00048828125, %s2264_s19 }
  0xf4   : > { %s641_s12 = smul.f32 %s625_s22, %s625_s22  ;;  %v644_v34 = vstv %s625_s22 }
  0xf5   : > { %s2266_s23 = spop %2265  ;;  %v645_v36 = vsub.f32 %v2760_v2, %v644_v34  ;;  %v646_v37 = vsub.f32 %v2762_v3, %v644_v34  ;;  %v767_v2 = vpop.permute.xlu1 %766 }
  0xf6   : > { %s640_s26 = smul.f32 0.00048828125, %s2266_s23  ;;  %s2869_s23 = scalar_lea.vmem %s3283_s8, %s2777_s16 }
  0xf8   : > { %s642_s29 = ssub.f32 %s640_s26, %s641_s12 }
  0xf9   : > { %v845_v3 = vpop.permute.xlu1 %844 }
  0xfa   : > { %s643_s1 = smax.f32 %s2597_s0, %s642_s29 }
  0xfb   : > { %s647_s2 = sadd.f32 1e-08, %s643_s1  ;;  %s2208_s1 = sshll.u32 %s2749_s25, 5 }
  0xfc   : > { %s2812_s27 = scalar_lea.vmem %s3280_s5, %s2208_s1  ;;  %s2818_s12 = scalar_lea.vmem %s3281_s6, %s2208_s1 }
  0xfd   : > { %v648_v31 = vstv %s647_s2  ;;  %v2452_v49 = vld [vmem:[%s2812_s27] sm:$0xff]   ;;  %v2453_v61 = vld [vmem:[%s2812_s27 + $0x8] sm:$0xff]   ;;  %v849_v4 = vpop.permute.xlu1 %848 }
  0xfe   : > { %2460 = vrsqrt.f32 %v648_v31  ;;  %2237 = vmatprep.mubr.msk.bf16.mxu1 %vm698_vm1, %v2452_v49 }
 0x101   : > { %v772_v5 = vpop.permute.xlu1 %771 }
 0x105   : > { %v853_v7 = vpop.permute.xlu1 %852 }
 0x109   : > { %v857_v17 = vpop.permute.xlu1 %856 }
 0x10b   : > { %v2461_v32 = vpop.eup %2460 }
 0x10c   : > { %2267 = vpush %v2461_v32 }
 0x13d   : > { %s2268_s14 = spop %2267 }
 0x13e   : > { %v651_v38 = vstv %s2268_s14 }
 0x13f   : > { %v652_v39 = vmul.f32 %v651_v38, %v645_v36  ;;  %v653_v40 = vmul.f32 %v651_v38, %v646_v37  ;;  %v958_v37 = vld [vmem:[%s2869_s23] sm:$0xff]  ;;  %v2600_v38 = vmov 2  }
 0x141   : > { %v665_v42 = vmul.f32 %v662_v35, %v653_v40  ;;  %v664_v43 = vmul.f32 %v657_v33, %v652_v39  ;;  %v959_v39 = vld [vmem:[%s2869_s23 + $0x8] sm:$0xff]  ;;  %v961_v40 = vld [vmem:[%s2869_s23 + $0x18] sm:$0xff] }
 0x143   : > { %v676_v45 = vadd.f32 %v669_v41, %v664_v43  ;;  %v677_v46 = vadd.f32 %v674_v44, %v665_v42  ;;  %v960_v41 = vld [vmem:[%s2869_s23 + $0x10] sm:$0xff]  ;;  %v2601_v42 = vmov 3   ;;  %v2602_v43 = vmov 7  }
 0x145   : > { %v680_v47 = vpack.c.bf16 %v677_v46, %v676_v45 }
 0x147   : > { %2230 = vmatpush3.bf16.msra.mxu0 %v680_v47 }
 0x14a   : > { %2232 = vmatmul.mubr.msk.bf16.vlgmr.msra.gmra.mxu0 %vm698_vm1, %v2451_v48 }
 0x20a   : > { %v736_v53 = vpop.f32.mrf.mxu0 }
 0x20b   : > { %v2832_v57 = vadd.f32 %v736_v53, %v686_v52 }
 0x20c   : > { %v2233_v54 = vpop.f32.mrf.mxu0 }
 0x20e   : > { %v739_v56 = vpop.f32.mrf.mxu0 }
 0x20f   : > { %v2834_v58 = vadd.f32 %v739_v56, %v691_v55 }
 0x210   : > { %v2234_v59 = vpop.f32.mrf.mxu0 }
 0x211   : > { %v753_v60 = vpack.c.bf16 %v2834_v58, %v2832_v57 }
 0x213   : > { %2235 = vmatprep.subr.bf16.mxu1 %v753_v60 }
 0x214   : > { %2236 = vmatpush3.bf16.msra.mxu1 %v753_v60 }
 0x217   : > { %2238 = vmatmul.mubr.msk.bf16.vlgmr.msra.gmra.mxu1 %vm698_vm1, %v2453_v61 }
 0x2d7   : > { %v2239_v6 = vpop.f32.mrf.mxu1 }
 0x2d8   : > { %v833_v9 = vadd.f32 %v2239_v6, %v767_v2 }
 0x2d9   : > { %v824_v8 = vpop.f32.mrf.mxu1 }
 0x2da   : > { %v825_v10 = vadd.f32 %v824_v8, %v757_v63  ;;  %v861_v19 = vmul.f32 %v853_v7, %v833_v9  ;;  %vm841_vm3 = vcmp.ge.f32.partialorder %v833_v9, 0.0 }
 0x2db   : > { %v2240_v11 = vpop.f32.mrf.mxu1 }
 0x2dc   : > { %v859_v15 = vmul.f32 %v845_v3, %v825_v10  ;;  %v836_v16 = vadd.f32 %v2240_v11, %v772_v5  ;;  %vm839_vm2 = vcmp.ge.f32.partialorder %v825_v10, 0.0  ;;  %v2846_v25 = vsel %vm841_vm3, %v833_v9, %v861_v19 }
 0x2dd   : > { %v827_v18 = vpop.f32.mrf.mxu1  ;;  %v884_v31 = vmul.f32 %v2846_v25, %v2846_v25 }
 0x2de   : > { %v828_v20 = vadd.f32 %v827_v18, %v762_v1  ;;  %v2842_v21 = vsel %vm839_vm2, %v825_v10, %v859_v15  ;;  %v862_v22 = vmul.f32 %v857_v17, %v836_v16  ;;  %vm842_vm5 = vcmp.ge.f32.partialorder %v836_v16, 0.0 }
 0x2df   : > { %v882_v26 = vmul.f32 %v2842_v21, %v2842_v21 }
 0x2e0   : > { %vm840_vm4 = vcmp.ge.f32.partialorder %v828_v20, 0.0  ;;  %v860_v23 = vmul.f32 %v849_v4, %v828_v20  ;;  %v2854_v29 = vsel %vm842_vm5, %v836_v16, %v862_v22 }
 0x2e1   : > { %v885_v34 = vmul.f32 %v2854_v29, %v2854_v29 }
 0x2e2   : > { %v2844_v24 = vsel %vm840_vm4, %v828_v20, %v860_v23 }
 0x2e3   : > { %v883_v27 = vmul.f32 %v2844_v24, %v2844_v24  ;;  %v867_v28 = vadd.f32 %v2844_v24, %v2842_v21 }
 0x2e5   : > { %v868_v30 = vadd.f32 %v867_v28, %v2846_v25  ;;  %v886_v32 = vadd.f32 %v883_v27, %v882_v26 }
 0x2e7   : > { %v869_v33 = vadd.f32 %v868_v30, %v2854_v29  ;;  %v887_v35 = vadd.f32 %v886_v32, %v884_v31 }
 0x2e9   : > { %870 = vadd.xlane.f32.xlu0 %v869_v33  ;;  %v888_v36 = vadd.f32 %v887_v35, %v885_v34 }
 0x2eb   : > { %889 = vadd.xlane.f32.xlu1 %v888_v36 }
 0x2fc   : > { %923 = vperm.xlu1 %2392, %v2790_v13  }
 0x2ff   : > { %919 = vperm.xlu0 %2391, %v2786_v12  }
 0x300   : > { %927 = vperm.xlu1 %2392, %v2794_v14  }
 0x303   : > { %2396 = vset.pattern.permute.xlu0 %v2594_v0 }
 0x304   : > { %2393 = vset.pattern.permute.xlu1 %v2600_v38  ;;  %990 = vperm.xlu0 %2396, %v958_v37  }
 0x305   : > { %939 = vperm.xlu1 %2393, %v2786_v12  }
 0x308   : > { %2399 = vset.pattern.permute.xlu0 %v2599_v62 }
 0x309   : > { %943 = vperm.xlu1 %2393, %v2790_v13   ;;  %1017 = vperm.xlu0 %2399, %v959_v39  }
 0x30d   : > { %2394 = vset.pattern.permute.xlu1 %v2599_v62  ;;  %1025 = vperm.xlu0 %2399, %v961_v40  }
 0x30e   : > { %931 = vperm.xlu1 %2394, %v2825_v51  }
 0x311   : > { %2404 = vset.pattern.permute.xlu0 %v2600_v38 }
 0x312   : > { %2395 = vset.pattern.permute.xlu1 %v2600_v38  ;;  %1037 = vperm.xlu0 %2404, %v958_v37  }
 0x313   : > { %947 = vperm.xlu1 %2395, %v2794_v14  }
 0x316   : > { %1049 = vperm.xlu0 %2404, %v961_v40  }
 0x317   : > { %951 = vperm.xlu1 %2395, %v2825_v51  }
 0x31a   : > { %2407 = vset.pattern.permute.xlu0 %v2601_v42 }
 0x31b   : > { %2397 = vset.pattern.permute.xlu1 %v2594_v0  ;;  %1069 = vperm.xlu0 %2407, %v2794_v14  }
 0x31c   : > { %995 = vperm.xlu1 %2397, %v959_v39  }
 0x31f   : > { %2410 = vset.pattern.permute.xlu0 %v2602_v43 }
 0x320   : > { %2398 = vset.pattern.permute.xlu1 %v2599_v62 }
 0x321   : > { %1013 = vperm.xlu1 %2398, %v958_v37  }
 0x325   : > { %2400 = vset.pattern.permute.xlu1 %v2594_v0 }
 0x326   : > { %1000 = vperm.xlu1 %2400, %v960_v41  }
 0x32a   : > { %2401 = vset.pattern.permute.xlu1 %v2599_v62 }
 0x32b   : > { %1021 = vperm.xlu1 %2401, %v960_v41  }
 0x32f   : > { %2402 = vset.pattern.permute.xlu1 %v2600_v38 }
 0x330   : > { %1041 = vperm.xlu1 %2402, %v959_v39  }
 0x334   : > { %2403 = vset.pattern.permute.xlu1 %v2594_v0 }
 0x335   : > { %1005 = vperm.xlu1 %2403, %v961_v40  }
 0x339   : > { %2405 = vset.pattern.permute.xlu1 %v2600_v38 }
 0x33a   : > { %1045 = vperm.xlu1 %2405, %v960_v41  }
 0x33e   : > { %2406 = vset.pattern.permute.xlu1 %v2601_v42 }
 0x33f   : > { %1061 = vperm.xlu1 %2406, %v2786_v12  }
 0x343   : > { %1065 = vperm.xlu1 %2406, %v2790_v13  }
 0x347   : > { %2408 = vset.pattern.permute.xlu1 %v2602_v43 }
 0x348   : > { %1085 = vperm.xlu1 %2408, %v2786_v12  }
 0x34c   : > { %1089 = vperm.xlu1 %2408, %v2790_v13  }
 0x350   : > { %2409 = vset.pattern.permute.xlu1 %v2601_v42 }
 0x351   : > { %1073 = vperm.xlu1 %2409, %v2825_v51  }
 0x355   : > { %2411 = vset.pattern.permute.xlu1 %v2602_v43 }
 0x372   : > { %v871_v44 = vpop.xlane.xlu0 %870 }
 0x373   : > { %v872_v45 = vrot.slane %v871_v44, 4 }
 0x374   : > { %v890_v46 = vpop.xlane.xlu1 %889 }
 0x375   : > { %v873_v47 = vadd.f32 %v872_v45, %v871_v44  ;;  %v891_v48 = vrot.slane %v890_v46, 4 }
 0x377   : > { %v874_v49 = vrot.slane %v873_v47, 2  ;;  %v892_v52 = vadd.f32 %v891_v48, %v890_v46 }
 0x378   : > { %v924_v2 = vpop.permute.xlu1 %923 }
 0x379   : > { %v875_v53 = vadd.f32 %v874_v49, %v873_v47  ;;  %v893_v54 = vrot.slane %v892_v52, 2 }
 0x37a   : > { %v920_v18 = vpop.permute.xlu0 %919 }
 0x37b   : > { %v876_v55 = vrot.slane %v875_v53, 1  ;;  %v894_v56 = vadd.f32 %v893_v54, %v892_v52 }
 0x37c   : > { %v928_v3 = vpop.permute.xlu1 %927 }
 0x37d   : > { %v877_v59 = vadd.f32 %v876_v55, %v875_v53  ;;  %v895_v60 = vrot.slane %v894_v56, 1  ;;  %v743_v53 = vlaneseq }
 0x37f   : > { %2269 = vpush %v877_v59  ;;  %v896_v61 = vadd.f32 %v895_v60, %v894_v56  ;;  %v991_v40 = vpop.permute.xlu0 %990  ;;  %v2918_v56 = vand.u32 127, %v743_v53 }
 0x380   : > { %v940_v4 = vpop.permute.xlu1 %939 }
 0x381   : > { %2271 = vpush %v896_v61  ;;  %vm962_vm6 = vcmp.ge.s32.totalorder %v2918_v56, 1  ;;  %vm975_vm7 = vcmp.lt.s32.totalorder %v2918_v56, 127  ;;  %vm1532_vm2 = vcmp.lt.s32.totalorder %v2918_v56, 126 }
 0x384   : > { %v944_v5 = vpop.permute.xlu1 %943  ;;  %v1018_v44 = vpop.permute.xlu0 %1017 }
 0x388   : > { %v1026_v46 = vpop.permute.xlu0 %1025 }
 0x389   : > { %v932_v10 = vpop.permute.xlu1 %931 }
 0x38d   : > { %v1038_v48 = vpop.permute.xlu0 %1037 }
 0x391   : > { %v1050_v52 = vpop.permute.xlu0 %1049 }
 0x396   : > { %v1070_v55 = vpop.permute.xlu0 %1069 }
 0x3b0   : > { %s2270_s26 = spop %2269 }
 0x3b1   : > { %s881_s29 = smul.f32 0.00024414063, %s2270_s26  ;;  %s2604_s26 = smov 127  }
 0x3b2   : > { %s2272_s14 = spop %2271 }
 0x3b3   : > { %s901_s1 = smul.f32 %s881_s29, %s881_s29  ;;  %v904_v6 = vstv %s881_s29 }
 0x3b4   : > { %s900_s2 = smul.f32 0.00024414063, %s2272_s14  ;;  %v905_v7 = vsub.f32 %v2842_v21, %v904_v6  ;;  %v906_v8 = vsub.f32 %v2844_v24, %v904_v6  ;;  %v907_v9 = vsub.f32 %v2846_v25, %v904_v6  ;;  %v908_v19 = vsub.f32 %v2854_v29, %v904_v6  ;;  %v948_v21 = vpop.permute.xlu1 %947 }
 0x3b5   : > { %v2605_v29 = vmov 4  }
 0x3b6   : > { %s902_s15 = ssub.f32 %s900_s2, %s901_s1  ;;  %s2978_s1 = scalar_lea.vmem %s3282_s7, %s2777_s16 }
 0x3b8   : > { %s903_s19 = smax.f32 %s2597_s0, %s902_s15  ;;  %v952_v30 = vpop.permute.xlu1 %951 }
 0x3b9   : > { %s909_s22 = sadd.f32 1e-08, %s903_s19 }
 0x3bb   : > { %v910_v63 = vstv %s909_s22 }
 0x3bc   : > { %2462 = vrsqrt.f32 %v910_v63  ;;  %v996_v32 = vpop.permute.xlu1 %995 }
 0x3c0   : > { %v1014_v33 = vpop.permute.xlu1 %1013 }
 0x3c4   : > { %v1001_v34 = vpop.permute.xlu1 %1000 }
 0x3c8   : > { %v1022_v35 = vpop.permute.xlu1 %1021 }
 0x3c9   : > { %v2463_v1 = vpop.eup %2462 }
 0x3ca   : > { %2273 = vpush %v2463_v1 }
 0x3cc   : > { %v1042_v36 = vpop.permute.xlu1 %1041 }
 0x3d0   : > { %v1006_v37 = vpop.permute.xlu1 %1005 }
 0x3d4   : > { %v1046_v39 = vpop.permute.xlu1 %1045 }
 0x3d8   : > { %v1062_v41 = vpop.permute.xlu1 %1061 }
 0x3dc   : > { %v1066_v45 = vpop.permute.xlu1 %1065 }
 0x3e0   : > { %v1086_v47 = vpop.permute.xlu1 %1085 }
 0x3e4   : > { %v1090_v49 = vpop.permute.xlu1 %1089 }
 0x3e8   : > { %v1074_v54 = vpop.permute.xlu1 %1073 }
 0x3fb   : > { %s2274_s25 = spop %2273 }
 0x3fc   : > { %v913_v11 = vstv %s2274_s25 }
 0x3fd   : > { %v914_v15 = vmul.f32 %v913_v11, %v905_v7  ;;  %v915_v16 = vmul.f32 %v913_v11, %v906_v8  ;;  %v916_v17 = vmul.f32 %v913_v11, %v907_v9  ;;  %v917_v23 = vmul.f32 %v913_v11, %v908_v19 }
 0x3ff   : > { %v935_v20 = vmul.f32 %v924_v2, %v915_v16  ;;  %v934_v22 = vmul.f32 %v920_v18, %v914_v15  ;;  %v936_v26 = vmul.f32 %v928_v3, %v916_v17  ;;  %v937_v24 = vmul.f32 %v932_v10, %v917_v23 }
 0x401   : > { %v955_v27 = vadd.f32 %v944_v5, %v935_v20  ;;  %v954_v28 = vadd.f32 %v940_v4, %v934_v22  ;;  %v2910_v25 = vadd.f32 %v948_v21, %v936_v26  ;;  %v957_v31 = vadd.f32 %v952_v30, %v937_v24 }
 0x403   : > { %965 = vrot.lane.b32.xlu0 %v955_v27, %s2603_s28  ;;  %963 = vrot.lane.b32.xlu1 %v954_v28, %s2603_s28  ;;  %v1028_v6 = vmul.f32 %v1014_v33, %v954_v28  ;;  %v1029_v7 = vmul.f32 %v1018_v44, %v955_v27  ;;  %v1031_v33 = vmul.f32 %v1026_v46, %v957_v31 }
 0x407   : > { %976 = vrot.lane.b32.xlu0 %v954_v28, %s2604_s26  ;;  %967 = vrot.lane.b32.xlu1 %v2910_v25, %s2603_s28 }
 0x40b   : > { %969 = vrot.lane.b32.xlu0 %v957_v31, %s2603_s28  ;;  %978 = vrot.lane.b32.xlu1 %v955_v27, %s2604_s26 }
 0x40f   : > { %982 = vrot.lane.b32.xlu0 %v957_v31, %s2604_s26  ;;  %980 = vrot.lane.b32.xlu1 %v2910_v25, %s2604_s26 }
 0x413   : > { %1093 = vperm.xlu0 %2410, %v2794_v14   ;;  %1097 = vperm.xlu1 %2411, %v2825_v51  }
 0x417   : > { %2413 = vset.pattern.permute.xlu1 %v2605_v29  ;;  %2412 = vset.pattern.permute.xlu0 %v2605_v29 }
 0x475   : > { %v964_v59 = vpop.permute.xlu1 %963  ;;  %v966_v60 = vpop.permute.xlu0 %965 }
 0x476   : > { %v971_v61 = vsel %vm962_vm6, %v964_v59, 0.0  ;;  %v972_v63 = vsel %vm962_vm6, %v966_v60, 0.0 }
 0x477   : > { %v1008_v3 = vmul.f32 %v991_v40, %v971_v61  ;;  %v1009_v5 = vmul.f32 %v996_v32, %v972_v63  ;;  %v1030_v32 = vmul.f32 %v1022_v35, %v2910_v25 }
 0x479   : > { %v968_v1 = vpop.permute.xlu1 %967  ;;  %v977_v2 = vpop.permute.xlu0 %976  ;;  %v1032_v11 = vadd.f32 %v1028_v6, %v1008_v3  ;;  %v1033_v16 = vadd.f32 %v1029_v7, %v1009_v5  ;;  %v2606_v7 = vmov 5  }
 0x47a   : > { %v984_v4 = vsel %vm975_vm7, %v977_v2, 0.0  ;;  %v973_v17 = vsel %vm962_vm6, %v968_v1, 0.0 }
 0x47b   : > { %v1052_v8 = vmul.f32 %v1038_v48, %v984_v4  ;;  %v1010_v27 = vmul.f32 %v1001_v34, %v973_v17 }
 0x47d   : > { %v979_v9 = vpop.permute.xlu1 %978  ;;  %v970_v10 = vpop.permute.xlu0 %969  ;;  %v1056_v20 = vadd.f32 %v1052_v8, %v1032_v11  ;;  %v1034_v48 = vadd.f32 %v1030_v32, %v1010_v27  ;;  %v2983_v27 = vld [vmem:[%s2783_s13 + $0x20] sm:$0xff] }
 0x47e   : > { %v985_v15 = vsel %vm975_vm7, %v979_v9, 0.0  ;;  %v974_v19 = vsel %vm962_vm6, %v970_v10, 0.0 }
 0x47f   : > { %v1053_v18 = vmul.f32 %v1042_v36, %v985_v15  ;;  %v1011_v28 = vmul.f32 %v1006_v37, %v974_v19  ;;  %v1076_v44 = vadd.f32 %v1062_v41, %v1056_v20 }
 0x481   : > { %v1057_v22 = vadd.f32 %v1053_v18, %v1033_v16  ;;  %v981_v23 = vpop.permute.xlu1 %980  ;;  %v983_v26 = vpop.permute.xlu0 %982  ;;  %v1035_v53 = vadd.f32 %v1031_v33, %v1011_v28  ;;  %v1100_v34 = vmul.f32 %v1086_v47, %v1076_v44  ;;  %vm1080_vm9 = vcmp.ge.f32.partialorder %v1076_v44, 0.0  ;;  %v2986_v28 = vld [vmem:[%s2783_s13 + $0x28] sm:$0xff] }
 0x482   : > { %v986_v21 = vsel %vm975_vm7, %v981_v23, 0.0  ;;  %v987_v24 = vsel %vm975_vm7, %v983_v26, 0.0  ;;  %v1206_v23 = vld [vmem:[%s2978_s1 + $0x8] sm:$0xff]  ;;  %v1205_v26 = vld [vmem:[%s2978_s1] sm:$0xff] }
 0x483   : > { %v1077_v30 = vadd.f32 %v1066_v45, %v1057_v22  ;;  %v1054_v36 = vmul.f32 %v1046_v39, %v986_v21  ;;  %v1055_v40 = vmul.f32 %v1050_v52, %v987_v24  ;;  %v2941_v2 = vsel %vm1080_vm9, %v1076_v44, %v1100_v34  ;;  %v2454_v22 = vld [vmem:[%s2818_s12] sm:$0xff]   ;;  %v2991_v21 = vld [vmem:[%s2783_s13 + $0x30] sm:$0xff] }
 0x484   : > { %v1123_v46 = vmul.f32 %v2941_v2, %v2941_v2  ;;  %2245 = vmatprep.mubr.msk.bf16.mxu0 %vm1239_vm12, %v2454_v22 }
 0x485   : > { %v1101_v59 = vmul.f32 %v1090_v49, %v1077_v30  ;;  %v1058_v60 = vadd.f32 %v1054_v36, %v1034_v48  ;;  %v1059_v61 = vadd.f32 %v1055_v40, %v1035_v53  ;;  %vm1081_vm8 = vcmp.ge.f32.partialorder %v1077_v30, 0.0 }
 0x487   : > { %v2939_v37 = vsel %vm1081_vm8, %v1077_v30, %v1101_v59  ;;  %v1079_v63 = vadd.f32 %v1074_v54, %v1059_v61  ;;  %v1078_v1 = vadd.f32 %v1070_v55, %v1058_v60 }
 0x488   : > { %v1124_v31 = vmul.f32 %v2939_v37, %v2939_v37  ;;  %v1108_v41 = vadd.f32 %v2939_v37, %v2941_v2 }
 0x489   : > { %vm1082_vm10 = vcmp.ge.f32.partialorder %v1078_v1, 0.0  ;;  %vm1083_vm11 = vcmp.ge.f32.partialorder %v1079_v63, 0.0 }
 0x48a   : > { %v1127_v55 = vadd.f32 %v1124_v31, %v1123_v46 }
 0x48e   : > { %v1098_v45 = vpop.permute.xlu1 %1097  ;;  %v1094_v25 = vpop.permute.xlu0 %1093 }
 0x48f   : > { %v1103_v35 = vmul.f32 %v1098_v45, %v1079_v63  ;;  %v1102_v39 = vmul.f32 %v1094_v25, %v1078_v1 }
 0x491   : > { %v2949_v47 = vsel %vm1082_vm10, %v1078_v1, %v1102_v39  ;;  %v2951_v49 = vsel %vm1083_vm11, %v1079_v63, %v1103_v35 }
 0x492   : > { %v1109_v52 = vadd.f32 %v1108_v41, %v2949_v47  ;;  %v1125_v54 = vmul.f32 %v2949_v47, %v2949_v47  ;;  %v1126_v4 = vmul.f32 %v2951_v49, %v2951_v49 }
 0x494   : > { %v1110_v3 = vadd.f32 %v1109_v52, %v2951_v49  ;;  %v1128_v5 = vadd.f32 %v1127_v55, %v1125_v54 }
 0x496   : > { %1111 = vadd.xlane.f32.xlu1 %v1110_v3  ;;  %v1129_v6 = vadd.f32 %v1128_v5, %v1126_v4  ;;  %v2455_v4 = vld [vmem:[%s2818_s12 + $0x8] sm:$0xff]   ;;  %v2456_v5 = vld [vmem:[%s2812_s27 + $0x10] sm:$0xff]  }
 0x497   : > { %2251 = vmatprep.mubr.msk.bf16.mxu1 %vm698_vm1, %v2456_v5 }
 0x498   : > { %1130 = vadd.xlane.f32.xlu0 %v1129_v6  ;;  %v3011_v6 = vld [vmem:[%s2783_s13 + $0x38] sm:$0xff] }
 0x4a7   : > { %1172 = vperm.xlu1 %2413, %v2825_v51  }
 0x4ab   : > { %2414 = vset.pattern.permute.xlu1 %v2606_v7 }
 0x4ac   : > { %1188 = vperm.xlu1 %2414, %v2794_v14  }
 0x4ae   : > { %1168 = vperm.xlu0 %2412, %v2794_v14  }
 0x4b0   : > { %1192 = vperm.xlu1 %2414, %v2825_v51  }
 0x4b2   : > { %2417 = vset.pattern.permute.xlu0 %v2594_v0 }
 0x4b3   : > { %1211 = vperm.xlu0 %2417, %v1205_v26  }
 0x4b4   : > { %2415 = vset.pattern.permute.xlu1 %v2605_v29 }
 0x4b5   : > { %1160 = vperm.xlu1 %2415, %v2786_v12  }
 0x4b7   : > { %1317 = vperm.xlu0 %2417, %v2986_v28  }
 0x4b9   : > { %1164 = vperm.xlu1 %2415, %v2790_v13  }
 0x4bb   : > { %2419 = vset.pattern.permute.xlu0 %v2598_v50 }
 0x4bc   : > { %1400 = vperm.xlu0 %2419, %v2983_v27  }
 0x4bd   : > { %2416 = vset.pattern.permute.xlu1 %v2606_v7 }
 0x4be   : > { %1180 = vperm.xlu1 %2416, %v2786_v12  }
 0x4c0   : > { %1408 = vperm.xlu0 %2419, %v2991_v21  }
 0x4c2   : > { %1184 = vperm.xlu1 %2416, %v2790_v13  }
 0x4c4   : > { %2423 = vset.pattern.permute.xlu0 %v2599_v62 }
 0x4c6   : > { %2418 = vset.pattern.permute.xlu1 %v2594_v0 }
 0x4c7   : > { %1216 = vperm.xlu1 %2418, %v1206_v23  }
 0x4cb   : > { %1312 = vperm.xlu1 %2418, %v2983_v27  }
 0x4cf   : > { %1322 = vperm.xlu1 %2418, %v2991_v21  }
 0x4d3   : > { %2420 = vset.pattern.permute.xlu1 %v2598_v50 }
 0x4d4   : > { %1404 = vperm.xlu1 %2420, %v2986_v28  }
 0x4d8   : > { %2421 = vset.pattern.permute.xlu1 %v2594_v0 }
 0x4d9   : > { %1327 = vperm.xlu1 %2421, %v3011_v6  }
 0x4dd   : > { %2422 = vset.pattern.permute.xlu1 %v2598_v50 }
 0x4de   : > { %1412 = vperm.xlu1 %2422, %v3011_v6  }
 0x4e2   : > { %2424 = vset.pattern.permute.xlu1 %v2599_v62 }
 0x51f   : > { %v1112_v8 = vpop.xlane.xlu1 %1111 }
 0x520   : > { %v1113_v14 = vrot.slane %v1112_v8, 4 }
 0x521   : > { %v1131_v51 = vpop.xlane.xlu0 %1130 }
 0x522   : > { %v1114_v9 = vadd.f32 %v1113_v14, %v1112_v8  ;;  %v1132_v10 = vrot.slane %v1131_v51, 4 }
 0x523   : > { %v1173_v32 = vpop.permute.xlu1 %1172 }
 0x524   : > { %v1133_v11 = vadd.f32 %v1132_v10, %v1131_v51  ;;  %v1115_v15 = vrot.slane %v1114_v9, 2 }
 0x526   : > { %v1134_v16 = vrot.slane %v1133_v11, 2  ;;  %v1116_v17 = vadd.f32 %v1115_v15, %v1114_v9 }
 0x527   : > { %v1189_v33 = vpop.permute.xlu1 %1188 }
 0x528   : > { %v1117_v18 = vrot.slane %v1116_v17, 1  ;;  %v1135_v19 = vadd.f32 %v1134_v16, %v1133_v11 }
 0x529   : > { %v1169_v1 = vpop.permute.xlu0 %1168 }
 0x52a   : > { %v1118_v12 = vadd.f32 %v1117_v18, %v1116_v17  ;;  %v1136_v20 = vrot.slane %v1135_v19, 1 }
 0x52b   : > { %v1193_v36 = vpop.permute.xlu1 %1192 }
 0x52c   : > { %2275 = vpush %v1118_v12  ;;  %v1137_v13 = vadd.f32 %v1136_v20, %v1135_v19  ;;  %v2457_v19 = vld [vmem:[%s2812_s27 + $0x18] sm:$0xff]  }
 0x52e   : > { %2277 = vpush %v1137_v13  ;;  %v1212_v14 = vpop.permute.xlu0 %1211 }
 0x530   : > { %v1161_v40 = vpop.permute.xlu1 %1160 }
 0x532   : > { %v1318_v13 = vpop.permute.xlu0 %1317 }
 0x534   : > { %v1165_v44 = vpop.permute.xlu1 %1164 }
 0x537   : > { %v1401_v23 = vpop.permute.xlu0 %1400 }
 0x539   : > { %v1181_v53 = vpop.permute.xlu1 %1180 }
 0x53d   : > { %v1185_v39 = vpop.permute.xlu1 %1184 }
 0x542   : > { %v1217_v11 = vpop.permute.xlu1 %1216 }
 0x546   : > { %v1313_v12 = vpop.permute.xlu1 %1312 }
 0x54a   : > { %v1323_v20 = vpop.permute.xlu1 %1322 }
 0x54f   : > { %v1405_v22 = vpop.permute.xlu1 %1404 }
 0x55d   : > { %s2276_s16 = spop %2275 }
 0x55e   : > { %s1122_s2 = smul.f32 0.00024414063, %s2276_s16 }
 0x55f   : > { %s2278_s15 = spop %2277 }
 0x560   : > { %s1142_s19 = smul.f32 %s1122_s2, %s1122_s2  ;;  %v1145_v48 = vstv %s1122_s2 }
 0x561   : > { %s1141_s22 = smul.f32 0.00024414063, %s2278_s15  ;;  %v1149_v59 = vsub.f32 %v2951_v49, %v1145_v48  ;;  %v1146_v60 = vsub.f32 %v2941_v2, %v1145_v48  ;;  %v1148_v61 = vsub.f32 %v2949_v47, %v1145_v48  ;;  %v1147_v34 = vsub.f32 %v2939_v37, %v1145_v48 }
 0x563   : > { %s1143_s25 = ssub.f32 %s1141_s22, %s1142_s19 }
 0x565   : > { %s1144_s28 = smax.f32 %s2597_s0, %s1143_s25  ;;  %s2607_s25 = smov 2  }
 0x566   : > { %s1150_s26 = sadd.f32 1e-08, %s1144_s28  ;;  %s2608_s28 = smov 126  }
 0x568   : > { %v1151_v24 = vstv %s1150_s26 }
 0x569   : > { %2464 = vrsqrt.f32 %v1151_v24  ;;  %v1328_v24 = vpop.permute.xlu1 %1327 }
 0x576   : > { %v2465_v30 = vpop.eup %2464 }
 0x577   : > { %2279 = vpush %v2465_v30 }
 0x5a8   : > { %s2280_s29 = spop %2279 }
 0x5a9   : > { %v1154_v63 = vstv %s2280_s29 }
 0x5aa   : > { %v1158_v45 = vmul.f32 %v1154_v63, %v1149_v59  ;;  %v1155_v25 = vmul.f32 %v1154_v63, %v1146_v60  ;;  %v1157_v31 = vmul.f32 %v1154_v63, %v1148_v61  ;;  %v1156_v35 = vmul.f32 %v1154_v63, %v1147_v34 }
 0x5ac   : > { %v1178_v41 = vmul.f32 %v1173_v32, %v1158_v45  ;;  %v1175_v46 = vmul.f32 %v1161_v40, %v1155_v25  ;;  %v1177_v52 = vmul.f32 %v1169_v1, %v1157_v31  ;;  %v1176_v49 = vmul.f32 %v1165_v44, %v1156_v35  ;;  %v1413_v44 = vpop.permute.xlu1 %1412 }
 0x5ae   : > { %v1195_v54 = vadd.f32 %v1181_v53, %v1175_v46  ;;  %v1197_v2 = vadd.f32 %v1189_v33, %v1177_v52  ;;  %v1196_v55 = vadd.f32 %v1185_v39, %v1176_v49  ;;  %v1198_v47 = vadd.f32 %v1193_v36, %v1178_v41 }
 0x5b0   : > { %v1204_v3 = vpack.c.bf16 %v1198_v47, %v1197_v2  ;;  %v1203_v37 = vpack.c.bf16 %v1196_v55, %v1195_v54  ;;  %v2178_v55 = vld [vmem:[%s2869_s23 + $0x20] sm:$0xff]  ;;  %v2179_v47 = vld [vmem:[%s2869_s23 + $0x28] sm:$0xff] }
 0x5b2   : > { %2241 = vmatprep.subr.bf16.mxu0 %v1204_v3 }
 0x5b3   : > { %2242 = vmatpush3.bf16.msra.mxu0 %v1204_v3  ;;  %v2181_v3 = vld [vmem:[%s2869_s23 + $0x38] sm:$0xff] }
 0x5b4   : > { %2243 = vmatprep.subr.bf16.mxu0 %v1203_v37 }
 0x5b7   : > { %2244 = vmatpush3.bf16.msra.mxu0 %v1203_v37  ;;  %v2180_v37 = vld [vmem:[%s2869_s23 + $0x30] sm:$0xff] }
 0x5ba   : > { %2246 = vmatmul.mubr.msk.bf16.vlgmr.msra.gmra.mxu0 %vm1239_vm12, %v2455_v4 }
 0x67a   : > { %v3017_v8 = vpop.f32.mrf.mxu0 }
 0x67c   : > { %v1280_v51 = vpop.f32.mrf.mxu0 }
 0x67d   : > { %v1281_v10 = vadd.f32 %v1280_v51, %v1212_v14 }
 0x67e   : > { %v3019_v9 = vpop.f32.mrf.mxu0 }
 0x67f   : > { %v3022_v17 = vadd.f32 %v1281_v10, %v2832_v57 }
 0x680   : > { %v1283_v15 = vpop.f32.mrf.mxu0 }
 0x681   : > { %v1284_v16 = vadd.f32 %v1283_v15, %v1217_v11 }
 0x683   : > { %v3025_v18 = vadd.f32 %v1284_v16, %v2834_v58  ;;  %v1409_v58 = vpop.permute.xlu0 %1408 }
 0x685   : > { %v1309_v50 = vpack.c.bf16 %v3025_v18, %v3022_v17 }
 0x687   : > { %2249 = vmatprep.subr.bf16.mxu1 %v1309_v50 }
 0x688   : > { %2250 = vmatpush3.bf16.msra.mxu1 %v1309_v50 }
 0x68b   : > { %2252 = vmatmul.mubr.msk.bf16.vlgmr.msra.gmra.mxu1 %vm698_vm1, %v2457_v19  ;;  %vm1519_vm1 = vcmp.ge.s32.totalorder %v2918_v56, 2 }
 0x74b   : > { %v2253_v26 = vpop.f32.mrf.mxu1 }
 0x74c   : > { %v1389_v30 = vadd.f32 %v2253_v26, %v1323_v20 }
 0x74d   : > { %v1380_v57 = vpop.f32.mrf.mxu1 }
 0x74e   : > { %v1381_v32 = vadd.f32 %v1380_v57, %v1313_v12  ;;  %v1417_v53 = vmul.f32 %v1409_v58, %v1389_v30  ;;  %vm1397_vm14 = vcmp.ge.f32.partialorder %v1389_v30, 0.0 }
 0x74f   : > { %v2254_v33 = vpop.f32.mrf.mxu1 }
 0x750   : > { %v1415_v36 = vmul.f32 %v1401_v23, %v1381_v32  ;;  %v1392_v40 = vadd.f32 %v2254_v33, %v1328_v24  ;;  %vm1395_vm13 = vcmp.ge.f32.partialorder %v1381_v32, 0.0  ;;  %v3033_v63 = vsel %vm1397_vm14, %v1389_v30, %v1417_v53 }
 0x751   : > { %v1383_v48 = vpop.f32.mrf.mxu1  ;;  %v1440_v39 = vmul.f32 %v3033_v63, %v3033_v63 }
 0x752   : > { %v1384_v59 = vadd.f32 %v1383_v48, %v1318_v13  ;;  %v3031_v60 = vsel %vm1395_vm13, %v1381_v32, %v1415_v36  ;;  %v1418_v61 = vmul.f32 %v1413_v44, %v1392_v40  ;;  %vm1398_vm0 = vcmp.ge.f32.partialorder %v1392_v40, 0.0 }
 0x753   : > { %v1438_v45 = vmul.f32 %v3031_v60, %v3031_v60 }
 0x754   : > { %vm1396_vm15 = vcmp.ge.f32.partialorder %v1384_v59, 0.0  ;;  %v1416_v34 = vmul.f32 %v1405_v22, %v1384_v59  ;;  %v3043_v35 = vsel %vm1398_vm0, %v1392_v40, %v1418_v61 }
 0x755   : > { %v1441_v49 = vmul.f32 %v3043_v35, %v3043_v35 }
 0x756   : > { %v3035_v1 = vsel %vm1396_vm15, %v1384_v59, %v1416_v34 }
 0x757   : > { %v1439_v25 = vmul.f32 %v3035_v1, %v3035_v1  ;;  %v1423_v31 = vadd.f32 %v3035_v1, %v3031_v60 }
 0x759   : > { %v1424_v41 = vadd.f32 %v1423_v31, %v3033_v63  ;;  %v1442_v46 = vadd.f32 %v1439_v25, %v1438_v45 }
 0x75b   : > { %v1425_v52 = vadd.f32 %v1424_v41, %v3043_v35  ;;  %v1443_v54 = vadd.f32 %v1442_v46, %v1440_v39 }
 0x75d   : > { %1426 = vadd.xlane.f32.xlu0 %v1425_v52  ;;  %v1444_v2 = vadd.f32 %v1443_v54, %v1441_v49 }
 0x75f   : > { %1445 = vadd.xlane.f32.xlu1 %v1444_v2 }
 0x770   : > { %1479 = vperm.xlu1 %2424, %v2986_v28  }
 0x773   : > { %1475 = vperm.xlu0 %2423, %v2983_v27  }
 0x774   : > { %1483 = vperm.xlu1 %2424, %v2991_v21  }
 0x777   : > { %2428 = vset.pattern.permute.xlu0 %v2594_v0 }
 0x778   : > { %2425 = vset.pattern.permute.xlu1 %v2600_v38  ;;  %1547 = vperm.xlu0 %2428, %v2178_v55  }
 0x779   : > { %1495 = vperm.xlu1 %2425, %v2983_v27  }
 0x77c   : > { %2431 = vset.pattern.permute.xlu0 %v2599_v62 }
 0x77d   : > { %1499 = vperm.xlu1 %2425, %v2986_v28   ;;  %1574 = vperm.xlu0 %2431, %v2179_v47  }
 0x781   : > { %2426 = vset.pattern.permute.xlu1 %v2599_v62  ;;  %1582 = vperm.xlu0 %2431, %v2181_v3  }
 0x782   : > { %1487 = vperm.xlu1 %2426, %v3011_v6  }
 0x785   : > { %2436 = vset.pattern.permute.xlu0 %v2600_v38 }
 0x786   : > { %2427 = vset.pattern.permute.xlu1 %v2600_v38  ;;  %1594 = vperm.xlu0 %2436, %v2178_v55  }
 0x787   : > { %1503 = vperm.xlu1 %2427, %v2991_v21  }
 0x78a   : > { %1606 = vperm.xlu0 %2436, %v2181_v3  }
 0x78b   : > { %1507 = vperm.xlu1 %2427, %v3011_v6  }
 0x78e   : > { %2439 = vset.pattern.permute.xlu0 %v2601_v42 }
 0x78f   : > { %2429 = vset.pattern.permute.xlu1 %v2594_v0  ;;  %1626 = vperm.xlu0 %2439, %v2991_v21  }
 0x790   : > { %1552 = vperm.xlu1 %2429, %v2179_v47  }
 0x793   : > { %2442 = vset.pattern.permute.xlu0 %v2602_v43 }
 0x794   : > { %2430 = vset.pattern.permute.xlu1 %v2599_v62 }
 0x795   : > { %1570 = vperm.xlu1 %2430, %v2178_v55  }
 0x799   : > { %2432 = vset.pattern.permute.xlu1 %v2594_v0 }
 0x79a   : > { %1557 = vperm.xlu1 %2432, %v2180_v37  }
 0x79e   : > { %2433 = vset.pattern.permute.xlu1 %v2599_v62 }
 0x79f   : > { %1578 = vperm.xlu1 %2433, %v2180_v37  }
 0x7a3   : > { %2434 = vset.pattern.permute.xlu1 %v2600_v38 }
 0x7a4   : > { %1598 = vperm.xlu1 %2434, %v2179_v47  }
 0x7a8   : > { %2435 = vset.pattern.permute.xlu1 %v2594_v0 }
 0x7a9   : > { %1562 = vperm.xlu1 %2435, %v2181_v3  }
 0x7ad   : > { %2437 = vset.pattern.permute.xlu1 %v2600_v38 }
 0x7ae   : > { %1602 = vperm.xlu1 %2437, %v2180_v37  }
 0x7b2   : > { %2438 = vset.pattern.permute.xlu1 %v2601_v42 }
 0x7b3   : > { %1618 = vperm.xlu1 %2438, %v2983_v27  }
 0x7b7   : > { %1622 = vperm.xlu1 %2438, %v2986_v28  }
 0x7bb   : > { %2440 = vset.pattern.permute.xlu1 %v2602_v43 }
 0x7bc   : > { %1642 = vperm.xlu1 %2440, %v2983_v27  }
 0x7c0   : > { %1646 = vperm.xlu1 %2440, %v2986_v28  }
 0x7c4   : > { %2441 = vset.pattern.permute.xlu1 %v2601_v42 }
 0x7c5   : > { %1630 = vperm.xlu1 %2441, %v3011_v6  }
 0x7c9   : > { %2443 = vset.pattern.permute.xlu1 %v2602_v43 }
 0x7e6   : > { %v1427_v62 = vpop.xlane.xlu0 %1426 }
 0x7e7   : > { %v1428_v38 = vrot.slane %v1427_v62, 4 }
 0x7e8   : > { %v1446_v4 = vpop.xlane.xlu1 %1445 }
 0x7e9   : > { %v1429_v5 = vadd.f32 %v1428_v38, %v1427_v62  ;;  %v1447_v14 = vrot.slane %v1446_v4, 4 }
 0x7eb   : > { %v1430_v51 = vrot.slane %v1429_v5, 2  ;;  %v1448_v10 = vadd.f32 %v1447_v14, %v1446_v4 }
 0x7ec   : > { %v1480_v13 = vpop.permute.xlu1 %1479 }
 0x7ed   : > { %v1449_v11 = vrot.slane %v1448_v10, 2  ;;  %v1431_v15 = vadd.f32 %v1430_v51, %v1429_v5 }
 0x7ee   : > { %v1476_v48 = vpop.permute.xlu0 %1475 }
 0x7ef   : > { %v1432_v16 = vrot.slane %v1431_v15, 1  ;;  %v1450_v50 = vadd.f32 %v1449_v11, %v1448_v10 }
 0x7f0   : > { %v1484_v22 = vpop.permute.xlu1 %1483 }
 0x7f1   : > { %v1433_v19 = vadd.f32 %v1432_v16, %v1431_v15  ;;  %v1451_v12 = vrot.slane %v1450_v50, 1 }
 0x7f3   : > { %2281 = vpush %v1433_v19  ;;  %v1452_v20 = vadd.f32 %v1451_v12, %v1450_v50  ;;  %v1548_v47 = vpop.permute.xlu0 %1547 }
 0x7f4   : > { %v1496_v23 = vpop.permute.xlu1 %1495 }
 0x7f5   : > { %2283 = vpush %v1452_v20 }
 0x7f8   : > { %v1500_v26 = vpop.permute.xlu1 %1499  ;;  %v1575_v37 = vpop.permute.xlu0 %1574 }
 0x7fc   : > { %v1583_v38 = vpop.permute.xlu0 %1582 }
 0x7fd   : > { %v1488_v58 = vpop.permute.xlu1 %1487 }
 0x801   : > { %v1595_v5 = vpop.permute.xlu0 %1594 }
 0x805   : > { %v1607_v51 = vpop.permute.xlu0 %1606 }
 0x80a   : > { %v1627_v11 = vpop.permute.xlu0 %1626 }
 0x824   : > { %s2282_s13 = spop %2281 }
 0x825   : > { %s1437_s27 = smul.f32 0.00024414063, %s2282_s13 }
 0x826   : > { %s2284_s23 = spop %2283 }
 0x827   : > { %s1457_s14 = smul.f32 %s1437_s27, %s1437_s27  ;;  %v1460_v24 = vstv %s1437_s27 }
 0x828   : > { %s1456_s16 = smul.f32 0.00024414063, %s2284_s23  ;;  %v1461_v57 = vsub.f32 %v3031_v60, %v1460_v24  ;;  %v1462_v30 = vsub.f32 %v3035_v1, %v1460_v24  ;;  %v1463_v32 = vsub.f32 %v3033_v63, %v1460_v24  ;;  %v1464_v53 = vsub.f32 %v3043_v35, %v1460_v24  ;;  %v1504_v60 = vpop.permute.xlu1 %1503 }
 0x82a   : > { %s1458_s2 = ssub.f32 %s1456_s16, %s1457_s14 }
 0x82c   : > { %s1459_s15 = smax.f32 %s2597_s0, %s1458_s2  ;;  %v1508_v39 = vpop.permute.xlu1 %1507 }
 0x82d   : > { %s1465_s19 = sadd.f32 1e-08, %s1459_s15 }
 0x82f   : > { %v1466_v42 = vstv %s1465_s19  ;;  %s2196_s19 = sshll.u32 %s2576_s20, 1 }
 0x830   : > { %2466 = vrsqrt.f32 %v1466_v42  ;;  %v1553_v35 = vpop.permute.xlu1 %1552 }
 0x834   : > { %v1571_v46 = vpop.permute.xlu1 %1570 }
 0x838   : > { %v1558_v52 = vpop.permute.xlu1 %1557 }
 0x83c   : > { %v1579_v49 = vpop.permute.xlu1 %1578 }
 0x83d   : > { %v2467_v43 = vpop.eup %2466 }
 0x83e   : > { %2285 = vpush %v2467_v43 }
 0x840   : > { %v1599_v54 = vpop.permute.xlu1 %1598 }
 0x844   : > { %v1563_v2 = vpop.permute.xlu1 %1562 }
 0x848   : > { %v1603_v55 = vpop.permute.xlu1 %1602 }
 0x84c   : > { %v1619_v3 = vpop.permute.xlu1 %1618 }
 0x850   : > { %v1623_v62 = vpop.permute.xlu1 %1622 }
 0x854   : > { %v1643_v4 = vpop.permute.xlu1 %1642 }
 0x858   : > { %v1647_v14 = vpop.permute.xlu1 %1646 }
 0x85c   : > { %v1631_v10 = vpop.permute.xlu1 %1630 }
 0x86f   : > { %s2286_s22 = spop %2285 }
 0x870   : > { %v1469_v33 = vstv %s2286_s22  ;;  %s2197_s22 = sshll.u32 %s2580_s21, 2 }
 0x871   : > { %v1470_v36 = vmul.f32 %v1469_v33, %v1461_v57  ;;  %v1471_v40 = vmul.f32 %v1469_v33, %v1462_v30  ;;  %v1472_v44 = vmul.f32 %v1469_v33, %v1463_v32  ;;  %v1473_v34 = vmul.f32 %v1469_v33, %v1464_v53 }
 0x873   : > { %v1490_v59 = vmul.f32 %v1476_v48, %v1470_v36  ;;  %v1491_v61 = vmul.f32 %v1480_v13, %v1471_v40  ;;  %v1492_v45 = vmul.f32 %v1484_v22, %v1472_v44  ;;  %v1493_v63 = vmul.f32 %v1488_v58, %v1473_v34 }
 0x875   : > { %v1511_v25 = vadd.f32 %v1500_v26, %v1491_v61  ;;  %v1510_v31 = vadd.f32 %v1496_v23, %v1490_v59  ;;  %v3093_v1 = vadd.f32 %v1504_v60, %v1492_v45  ;;  %v1513_v41 = vadd.f32 %v1508_v39, %v1493_v63 }
 0x877   : > { %1522 = vrot.lane.b32.xlu0 %v1511_v25, %s2607_s25  ;;  %1520 = vrot.lane.b32.xlu1 %v1510_v31, %s2607_s25  ;;  %v1585_v22 = vmul.f32 %v1571_v46, %v1510_v31  ;;  %v1586_v23 = vmul.f32 %v1575_v37, %v1511_v25  ;;  %v1587_v60 = vmul.f32 %v1579_v49, %v3093_v1 }
 0x878   : > { %v1588_v63 = vmul.f32 %v1583_v38, %v1513_v41 }
 0x87b   : > { %1533 = vrot.lane.b32.xlu0 %v1510_v31, %s2608_s28  ;;  %1524 = vrot.lane.b32.xlu1 %v3093_v1, %s2607_s25 }
 0x87f   : > { %1526 = vrot.lane.b32.xlu0 %v1513_v41, %s2607_s25  ;;  %1535 = vrot.lane.b32.xlu1 %v1511_v25, %s2608_s28  ;;  %s1879_s25 = sadd.s32 %s2197_s22, %s2196_s19 }
 0x883   : > { %1539 = vrot.lane.b32.xlu0 %v1513_v41, %s2608_s28  ;;  %1537 = vrot.lane.b32.xlu1 %v3093_v1, %s2608_s28 }
 0x887   : > { %1650 = vperm.xlu0 %2442, %v2991_v21   ;;  %1654 = vperm.xlu1 %2443, %v3011_v6  }
 0x88b   : > { %2445 = vset.pattern.permute.xlu1 %v2605_v29  ;;  %2444 = vset.pattern.permute.xlu0 %v2605_v29 }
 0x8e9   : > { %v1521_v15 = vpop.permute.xlu1 %1520  ;;  %v1523_v16 = vpop.permute.xlu0 %1522 }
 0x8ea   : > { %v1528_v50 = vsel %vm1519_vm1, %v1521_v15, 0.0  ;;  %v1529_v19 = vsel %vm1519_vm1, %v1523_v16, 0.0 }
 0x8eb   : > { %v1565_v42 = vmul.f32 %v1548_v47, %v1528_v50  ;;  %v1566_v13 = vmul.f32 %v1553_v35, %v1529_v19 }
 0x8ed   : > { %v1525_v12 = vpop.permute.xlu1 %1524  ;;  %v1534_v20 = vpop.permute.xlu0 %1533  ;;  %v1589_v30 = vadd.f32 %v1585_v22, %v1565_v42  ;;  %v1590_v58 = vadd.f32 %v1586_v23, %v1566_v13  ;;  %v1208_v13 = vld [vmem:[%s2978_s1 + $0x18] sm:$0xff] }
 0x8ee   : > { %v1541_v43 = vsel %vm1532_vm2, %v1534_v20, 0.0  ;;  %v1530_v33 = vsel %vm1519_vm1, %v1525_v12, 0.0 }
 0x8ef   : > { %v1609_v26 = vmul.f32 %v1595_v5, %v1541_v43  ;;  %v1567_v61 = vmul.f32 %v1558_v52, %v1530_v33  ;;  %v1207_v43 = vld [vmem:[%s2978_s1 + $0x10] sm:$0xff]  ;;  %v2186_v33 = vld [vmem:[%s2978_s1 + $0x20] sm:$0xff] }
 0x8f1   : > { %v1536_v24 = vpop.permute.xlu1 %1535  ;;  %v1527_v57 = vpop.permute.xlu0 %1526  ;;  %v1613_v44 = vadd.f32 %v1609_v26, %v1589_v30 }
 0x8f2   : > { %v1542_v32 = vsel %vm1532_vm2, %v1536_v24, 0.0  ;;  %v1531_v40 = vsel %vm1519_vm1, %v1527_v57, 0.0 }
 0x8f3   : > { %v1610_v36 = vmul.f32 %v1599_v54, %v1542_v32  ;;  %v1568_v34 = vmul.f32 %v1563_v2, %v1531_v40  ;;  %v1633_v46 = vadd.f32 %v1619_v3, %v1613_v44  ;;  %v1591_v54 = vadd.f32 %v1587_v60, %v1567_v61  ;;  %v2188_v40 = vld [vmem:[%s2978_s1 + $0x30] sm:$0xff]  ;;  %v2189_v44 = vld [vmem:[%s2978_s1 + $0x38] sm:$0xff] }
 0x8f5   : > { %v1614_v48 = vadd.f32 %v1610_v36, %v1590_v58  ;;  %v1538_v53 = vpop.permute.xlu1 %1537  ;;  %v1540_v59 = vpop.permute.xlu0 %1539  ;;  %v1592_v47 = vadd.f32 %v1588_v63, %v1568_v34  ;;  %v1657_v2 = vmul.f32 %v1643_v4, %v1633_v46  ;;  %vm1637_vm4 = vcmp.ge.f32.partialorder %v1633_v46, 0.0  ;;  %v2458_v58 = vld [vmem:[%s2818_s12 + $0x10] sm:$0xff]   ;;  %v2187_v36 = vld [vmem:[%s2978_s1 + $0x28] sm:$0xff]  ;;  %s3169_s1 = sand.u32 1, %s2568_s18  }
 0x8f6   : > { %v1543_v45 = vsel %vm1532_vm2, %v1538_v53, 0.0  ;;  %v1544_v25 = vsel %vm1532_vm2, %v1540_v59, 0.0  ;;  %2259 = vmatprep.mubr.msk.bf16.mxu0 %vm1239_vm12, %v2458_v58  ;;  %s2133_s15 = sshll.u32 %s3169_s1, 4 }
 0x8f7   : > { %v1634_v31 = vadd.f32 %v1623_v62, %v1614_v48  ;;  %v1611_v39 = vmul.f32 %v1603_v55, %v1543_v45  ;;  %v1612_v35 = vmul.f32 %v1607_v51, %v1544_v25  ;;  %v3122_v50 = vsel %vm1637_vm4, %v1633_v46, %v1657_v2  ;;  %s3179_s20 = scalar_lea.vmem [#allocation2], %s2133_s15 }
 0x8f8   : > { %v1680_v38 = vmul.f32 %v3122_v50, %v3122_v50  ;;  %s1882_s21 = sshll.u32 %s3179_s20, 4  ;;  %s3188_s21 = int_to_ptr.vmem [resolvable:$true] %s1882_s21 }
 0x8f9   : > { %v1658_v37 = vmul.f32 %v1647_v14, %v1634_v31  ;;  %vm1638_vm3 = vcmp.ge.f32.partialorder %v1634_v31, 0.0  ;;  %v1615_v5 = vadd.f32 %v1611_v39, %v1591_v54  ;;  %v1616_v52 = vadd.f32 %v1612_v35, %v1592_v47 }
 0x8fb   : > { %v3120_v15 = vsel %vm1638_vm3, %v1634_v31, %v1658_v37  ;;  %v1636_v16 = vadd.f32 %v1631_v10, %v1616_v52  ;;  %v1635_v56 = vadd.f32 %v1627_v11, %v1615_v5 }
 0x8fc   : > { %v1681_v41 = vmul.f32 %v3120_v15, %v3120_v15  ;;  %v1665_v3 = vadd.f32 %v3120_v15, %v3122_v50 }
 0x8fd   : > { %vm1640_vm5 = vcmp.ge.f32.partialorder %v1636_v16, 0.0  ;;  %vm1639_vm6 = vcmp.ge.f32.partialorder %v1635_v56, 0.0 }
 0x8fe   : > { %v1684_v11 = vadd.f32 %v1681_v41, %v1680_v38 }
 0x902   : > { %v1655_v62 = vpop.permute.xlu1 %1654  ;;  %v1651_v1 = vpop.permute.xlu0 %1650 }
 0x903   : > { %v1660_v49 = vmul.f32 %v1655_v62, %v1636_v16  ;;  %v1659_v55 = vmul.f32 %v1651_v1, %v1635_v56 }
 0x905   : > { %v3130_v4 = vsel %vm1640_vm5, %v1636_v16, %v1660_v49  ;;  %v3132_v14 = vsel %vm1639_vm6, %v1635_v56, %v1659_v55 }
 0x906   : > { %v1666_v51 = vadd.f32 %v1665_v3, %v3132_v14  ;;  %v1682_v10 = vmul.f32 %v3132_v14, %v3132_v14  ;;  %v1683_v12 = vmul.f32 %v3130_v4, %v3130_v4 }
 0x908   : > { %v1667_v19 = vadd.f32 %v1666_v51, %v3130_v4  ;;  %v1685_v20 = vadd.f32 %v1684_v11, %v1682_v10 }
 0x90a   : > { %1668 = vadd.xlane.f32.xlu1 %v1667_v19  ;;  %v1686_v42 = vadd.f32 %v1685_v20, %v1683_v12 }
 0x90c   : > { %1687 = vadd.xlane.f32.xlu0 %v1686_v42 }
 0x91b   : > { %1729 = vperm.xlu1 %2445, %v3011_v6  }
 0x91f   : > { %2446 = vset.pattern.permute.xlu1 %v2606_v7 }
 0x920   : > { %1745 = vperm.xlu1 %2446, %v2991_v21  }
 0x922   : > { %1725 = vperm.xlu0 %2444, %v2991_v21  }
 0x924   : > { %1749 = vperm.xlu1 %2446, %v3011_v6  }
 0x926   : > { %2449 = vset.pattern.permute.xlu0 %v2594_v0 }
 0x927   : > { %1221 = vperm.xlu0 %2449, %v1207_v43  }
 0x928   : > { %2447 = vset.pattern.permute.xlu1 %v2605_v29 }
 0x929   : > { %1717 = vperm.xlu1 %2447, %v2983_v27  }
 0x92b   : > { %1775 = vperm.xlu0 %2449, %v2187_v36  }
 0x92d   : > { %1721 = vperm.xlu1 %2447, %v2986_v28  }
 0x92f   : > { %1785 = vperm.xlu0 %2449, %v2189_v44  }
 0x931   : > { %2448 = vset.pattern.permute.xlu1 %v2606_v7 }
 0x932   : > { %1737 = vperm.xlu1 %2448, %v2983_v27  }
 0x936   : > { %1741 = vperm.xlu1 %2448, %v2986_v28  }
 0x93a   : > { %2450 = vset.pattern.permute.xlu1 %v2594_v0 }
 0x93b   : > { %1226 = vperm.xlu1 %2450, %v1208_v13  }
 0x93f   : > { %1770 = vperm.xlu1 %2450, %v2186_v33  }
 0x943   : > { %1780 = vperm.xlu1 %2450, %v2188_v40  }
 0x993   : > { %v1669_v21 = vpop.xlane.xlu1 %1668 }
 0x994   : > { %v1670_v6 = vrot.slane %v1669_v21, 4 }
 0x995   : > { %v1688_v22 = vpop.xlane.xlu0 %1687 }
 0x996   : > { %v1671_v29 = vadd.f32 %v1670_v6, %v1669_v21  ;;  %v1689_v23 = vrot.slane %v1688_v22, 4 }
 0x997   : > { %v1730_v59 = vpop.permute.xlu1 %1729 }
 0x998   : > { %v1672_v26 = vrot.slane %v1671_v29, 2  ;;  %v1690_v24 = vadd.f32 %v1689_v23, %v1688_v22 }
 0x99a   : > { %v1691_v7 = vrot.slane %v1690_v24, 2  ;;  %v1673_v27 = vadd.f32 %v1672_v26, %v1671_v29 }
 0x99b   : > { %v1746_v61 = vpop.permute.xlu1 %1745 }
 0x99c   : > { %v1674_v57 = vrot.slane %v1673_v27, 1  ;;  %v1692_v28 = vadd.f32 %v1691_v7, %v1690_v24 }
 0x99d   : > { %v1726_v2 = vpop.permute.xlu0 %1725 }
 0x99e   : > { %v1675_v30 = vadd.f32 %v1674_v57, %v1673_v27  ;;  %v1693_v32 = vrot.slane %v1692_v28, 1 }
 0x99f   : > { %v1750_v34 = vpop.permute.xlu1 %1749 }
 0x9a0   : > { %2287 = vpush %v1675_v30  ;;  %v1694_v0 = vadd.f32 %v1693_v32, %v1692_v28 }
 0x9a2   : > { %2289 = vpush %v1694_v0  ;;  %v1222_v51 = vpop.permute.xlu0 %1221 }
 0x9a3   : > { %v1289_v20 = vadd.f32 %v3017_v8, %v1222_v51 }
 0x9a4   : > { %v1718_v45 = vpop.permute.xlu1 %1717 }
 0x9a6   : > { %v1776_v11 = vpop.permute.xlu0 %1775 }
 0x9a8   : > { %v1722_v25 = vpop.permute.xlu1 %1721 }
 0x9aa   : > { %v1786_v6 = vpop.permute.xlu0 %1785 }
 0x9ad   : > { %v1738_v60 = vpop.permute.xlu1 %1737 }
 0x9b1   : > { %v1742_v41 = vpop.permute.xlu1 %1741 }
 0x9d1   : > { %s2288_s26 = spop %2287 }
 0x9d2   : > { %s1679_s29 = smul.f32 0.00024414063, %s2288_s26  ;;  %s2198_s26 = sshll.u32 %s1879_s25, 7 }
 0x9d3   : > { %s2290_s13 = spop %2289 }
 0x9d4   : > { %s1699_s27 = smul.f32 %s1679_s29, %s1679_s29  ;;  %v1702_v31 = vstv %s1679_s29 }
 0x9d5   : > { %s1698_s23 = smul.f32 0.00024414063, %s2290_s13  ;;  %v1703_v63 = vsub.f32 %v3122_v50, %v1702_v31  ;;  %v1704_v39 = vsub.f32 %v3120_v15, %v1702_v31  ;;  %v1705_v35 = vsub.f32 %v3132_v14, %v1702_v31  ;;  %v1706_v46 = vsub.f32 %v3130_v4, %v1702_v31  ;;  %v2459_v4 = vld [vmem:[%s2818_s12 + $0x18] sm:$0xff]   ;;  %v1227_v14 = vpop.permute.xlu1 %1226  ;;  %s551_s12 = scalar_lea.vmem [#allocation4], %s2133_s15 }
 0x9d6   : > { %s1900_s28 = sshll.u32 %s551_s12, 4  ;;  %v1292_v29 = vadd.f32 %v3019_v9, %v1227_v14  ;;  %s2609_s15 = smov [#allocation4]   ;;  %s3176_s28 = int_to_ptr.vmem [resolvable:$true] %s1900_s28 }
 0x9d7   : > { %s1700_s14 = ssub.f32 %s1698_s23, %s1699_s27  ;;  %s3186_s27 = scalar_lea.hbm %s3286_s11, %s2198_s26 }
 0x9d8   : > { %s2474_s19 = sshll.u32 %s2609_s15, 4  ;;  %s2475_s19 = int_to_ptr.vmem [resolvable:$false] %s2474_s19 }
 0x9d9   : > { %s1701_s16 = smax.f32 %s2597_s0, %s1700_s14  ;;  %v1771_v10 = vpop.permute.xlu1 %1770  ;;  %s2476_s22 = scalar_lea.vmem %s2475_s19, 512 }
 0x9da   : > { %s1707_s2 = sadd.f32 1e-08, %s1701_s16  ;;  %s3194_s16 = scalar_lea.hbm %s3285_s10, %s2198_s26 }
 0x9db   : > { %p2477_p4 = scmp.lt.s32.totalorder %s3176_s28, %s2475_s19 }
 0x9dc   : > { %v1708_v48 = vstv %s1707_s2  ;;  %s1867_s2 = scalar_lea.sflag [#allocation5], %s3169_s1 }
 0x9dd   : > { %2468 = vrsqrt.f32 %v1708_v48  ;;  %v1781_v12 = vpop.permute.xlu1 %1780 }
 0x9ea   : > { %v2469_v53 = vpop.eup %2468 }
 0x9eb   : > { %2291 = vpush %v2469_v53 }
 0xa1c   : > { %s2292_s0 = spop %2291 }
 0xa1d   : > { %v1711_v54 = vstv %s2292_s0  ;;  %s2470_s0 = scalar_lea.vmem %s3176_s28, 256 }
 0xa1e   : > { %v1712_v47 = vmul.f32 %v1711_v54, %v1703_v63  ;;  %v1713_v37 = vmul.f32 %v1711_v54, %v1704_v39  ;;  %v1714_v5 = vmul.f32 %v1711_v54, %v1705_v35  ;;  %v1715_v52 = vmul.f32 %v1711_v54, %v1706_v46  ;;  %p2471_p0 = scmp.ne.s32.totalorder %s3176_s28, %s2470_s0  ;;  %p2478_p5 = scmp.lt.s32.totalorder %s2476_s22, %s2470_s0 }
 0xa20   : > { %v1732_v16 = vmul.f32 %v1718_v45, %v1712_v47  ;;  %v1733_v56 = vmul.f32 %v1722_v25, %v1713_v37  ;;  %v1734_v62 = vmul.f32 %v1726_v2, %v1714_v5  ;;  %v1735_v1 = vmul.f32 %v1730_v59, %v1715_v52  ;;  %p2472_p1 = pnand %p2471_p0, %p2724_p3  ;;  %p2479_p6 = por %p2478_p5, %p2477_p4 }
 0xa22   : > { %v1754_v50 = vadd.f32 %v1746_v61, %v1734_v62  ;;  %v1755_v15 = vadd.f32 %v1750_v34, %v1735_v1  ;;  %v1752_v49 = vadd.f32 %v1738_v60, %v1732_v16  ;;  %v1753_v55 = vadd.f32 %v1742_v41, %v1733_v56  ;;  %p2473_p2 = pneg %p2472_p1 }
 0xa24   : > { %v1762_v3 = vpack.c.bf16 %v1755_v15, %v1754_v50  ;;  %v1761_v38 = vpack.c.bf16 %v1753_v55, %v1752_v49  ;;  %p2480_p7 = pnand %p2479_p6, %p2473_p2 }
 0xa26   : > { %2255 = vmatprep.subr.bf16.mxu0 %v1762_v3 }
 0xa27   : > { %2256 = vmatpush3.bf16.msra.mxu0 %v1762_v3 }
 0xa28   : > { %2257 = vmatprep.subr.bf16.mxu0 %v1761_v38 }
 0xa2b   : > { %2258 = vmatpush3.bf16.msra.mxu0 %v1761_v38 }
 0xa2e   : > { %2260 = vmatmul.mubr.msk.bf16.vlgmr.msra.gmra.mxu0 %vm1239_vm12, %v2459_v4 }
 0xaee   : > { %v2261_v19 = vpop.f32.mrf.mxu0 }
 0xaef   : > { %v1847_v42 = vadd.f32 %v2261_v19, %v1781_v12 }
 0xaf0   : > { %v1838_v43 = vpop.f32.mrf.mxu0 }
 0xaf1   : > { %v1855_v13 = vadd.f32 %v1847_v42, %v1289_v20  ;;  %v1839_v21 = vadd.f32 %v1838_v43, %v1771_v10 }
 0xaf2   : > { %v2262_v22 = vpop.f32.mrf.mxu0 }
 0xaf3   : > { %1859 = vst [vmem:[%s551_s12] sm:$0xff] %v1855_v13  ;;  %v1853_v8 = vadd.f32 %v1839_v21, %v3022_v17  ;;  %v1850_v23 = vadd.f32 %v2262_v22, %v1786_v6 }
 0xaf4   : > { %v1841_v26 = vpop.f32.mrf.mxu0 }
 0xaf5   : > { %1857 = vst [vmem:[%s3179_s20] sm:$0xff] %v1853_v8  ;;  %v1856_v24 = vadd.f32 %v1850_v23, %v1292_v29  ;;  %v1842_v9 = vadd.f32 %v1841_v26, %v1776_v11 }
 0xaf7   : > { %1860 = vst [vmem:[%s551_s12 + $0x8] sm:$0xff] %v1856_v24  ;;  %v1854_v17 = vadd.f32 %v1842_v9, %v3025_v18 }
 0xaf8   : > { %2483 = shalt.err (!%p2480_p7)
}
 0xaf9   : > { %s2484_s25 = scalar_lea.hbm %s3186_s27, 256  ;;  %s2488_s29 = scalar_lea.hbm %s3286_s11, 1024 }
 0xafa   : > { %p2485_p9 = scmp.ne.s32.totalorder %s3186_s27, %s2484_s25  ;;  %p2489_p12 = scmp.lt.s32.totalorder %s3186_s27, %s3286_s11 }
 0xafb   : > { %p2490_p13 = scmp.lt.s32.totalorder %s2488_s29, %s2484_s25 }
 0xafc   : > { %p2486_p10 = pnand %p2485_p9, %p2724_p3 }
 0xafd   : > { %p2491_p0 = por %p2490_p13, %p2489_p12 }
 0xafe   : > { %p2487_p11 = pneg %p2486_p10 }
 0xb00   : > { %p2492_p1 = pnand %p2491_p0, %p2487_p11 }
 0xb02   : > { %2495 = shalt.err (!%p2492_p1)
}
 0xb03   : > { %s2610_s14 = smov 128   ;;  %s2611_s0 = smov 8   ;;  %1858 = vst [vmem:[%s3179_s20 + $0x8] sm:$0xff] %v1854_v17 }
 0xb04   : > { %2294 = dma.vmem_to_hbm [thread:$0]  (%p2724_p3), %s3176_s28, 256, %s3186_s27, %s1867_s2, %s2610_s14, %s2610_s14, %s2611_s0  }
 0xb05   : > { %s1862_s15 = scalar_lea.sflag [#allocation3], %s3169_s1  ;;  %s2496_s19 = scalar_lea.vmem %s3188_s21, 256 }
 0xb06   : > { %p2497_p2 = scmp.ne.s32.totalorder %s3188_s21, %s2496_s19  ;;  %s2612_s22 = smov [#allocation2]  }
 0xb07   : > { %s2500_s25 = sshll.u32 %s2612_s22, 4  ;;  %s2501_s25 = int_to_ptr.vmem [resolvable:$false] %s2500_s25 }
 0xb08   : > { %p2498_p4 = pnand %p2497_p2, %p2724_p3  ;;  %s2502_s12 = scalar_lea.vmem %s2501_s25, 512 }
 0xb09   : > { %p2503_p6 = scmp.lt.s32.totalorder %s3188_s21, %s2501_s25  ;;  %p2504_p7 = scmp.lt.s32.totalorder %s2502_s12, %s2496_s19 }
 0xb0a   : > { %p2499_p5 = pneg %p2498_p4 }
 0xb0b   : > { %p2505_p9 = por %p2504_p7, %p2503_p6 }
 0xb0d   : > { %p2506_p10 = pnand %p2505_p9, %p2499_p5 }
 0xb0f   : > { %2509 = shalt.err (!%p2506_p10)
}
 0xb10   : > { %s2510_s28 = scalar_lea.hbm %s3194_s16, 256  ;;  %s2514_s27 = scalar_lea.hbm %s3285_s10, 1024 }
 0xb11   : > { %p2511_p11 = scmp.ne.s32.totalorder %s3194_s16, %s2510_s28  ;;  %p2515_p0 = scmp.lt.s32.totalorder %s3194_s16, %s3285_s10 }
 0xb12   : > { %p2516_p1 = scmp.lt.s32.totalorder %s2514_s27, %s2510_s28 }
 0xb13   : > { %p2512_p12 = pnand %p2511_p11, %p2724_p3 }
 0xb14   : > { %p2517_p2 = por %p2516_p1, %p2515_p0 }
 0xb15   : > { %p2513_p13 = pneg %p2512_p12 }
 0xb17   : > { %p2518_p4 = pnand %p2517_p2, %p2513_p13 }
 0xb19   : > { %2521 = shalt.err (!%p2518_p4)
}
 0xb1a   : > { %2293 = dma.vmem_to_hbm [thread:$0]  (%p2724_p3), %s3188_s21, 256, %s3194_s16, %s1862_s15, %s2610_s14, %s2610_s14, %s2611_s0  }
 0xb1b PF: > { %p2304_p5 = scmp.ge.s32.totalorder %s2592_s24, 2  ;;  %s1915_s13 = sand.u32 1, %s2564_s17  }
 0xb1c   : > { %s1916_s23 = scalar_lea.sflag [#allocation3], %s1915_s13 }
 0xb1d   : > { %p2298_p6 = pnand %p2304_p5, %p2733_p8 }
 0xb1f   : > { %p2299_p7 = pneg %p2298_p6 }
 0xb21   : > { %2555 = dma.done.wait (%p2299_p7), %s1916_s23, 256  }
 0xb22   : > { %2557 = vsyncadd (%p2299_p7), %s1916_s23, 4294967040  ;;  %s1925_s19 = scalar_lea.sflag [#allocation5], %s1915_s13 }
 0xb23   : > { %2559 = dma.done.wait (%p2299_p7), %s1925_s19, 256  }
 0xb24   : > { %2561 = vsyncadd (%p2299_p7), %s1925_s19, 4294967040  ;;  %s28_s24 = sadd.s32 1, %s2592_s24   ;;  %s3309_s30 = sld [smem:[#allocation8_spill]] }
 0xb25   : > { %p25_p9 = scmp.ge.s32.totalorder %s28_s24, 6   ;;  %s3310_s19 = sld [smem:[#allocation14_spill]] }
 0xb26   : > { %s3311_s20 = sld [smem:[#allocation9_spill]]  ;;  %s3315_s17 = smov %s2568_s18 }
 0xb27   : > { %s3312_s21 = sld [smem:[#allocation10_spill]]  ;;  %27 = sbr.rel (!%p25_p9) target bundleno = 11 (0xb), region = 144 }
 0xb28   : > { %s3313_s22 = sld [smem:[#allocation11_spill]] }
 0xb29   : > { %s3314_s23 = sld [smem:[#allocation12_spill]] }
 0xb2a   : > { %s3316_s18 = smov %s3309_s30 }
 0xb2c   :  { %1930 = vsyncpa [#allocation3], 1 }
 0xb2d   :  { %1932 = vsyncpa [#allocation3 + $0x1], 1 }
 0xb2e   :  { %1933 = vsyncpa [#allocation5], 1 }
 0xb2f   :  { %1935 = vsyncpa [#allocation5 + $0x1], 1 }

</bundles_post_ra>
